<compile_context>
chip_gen: v7x
topology: tpu7x:2x2x1
jax: 0.10.0
libtpu: 0.0.40
codegen_flags: <defaults>
</compile_context>

<pallas_src>
import functools
import math

import numpy as np
import jax
import jax.numpy as jnp
from jax.experimental import pallas as pl
from jax.experimental.pallas import tpu as pltpu


def _round_up(x, m):
    return (x + m - 1) // m * m


def _relu(z):
    return jnp.maximum(z, 0.0)


def _log_softmax(z):
    m = jnp.max(z, axis=-1, keepdims=True)
    lse = jnp.log(jnp.sum(jnp.exp(z - m), axis=-1, keepdims=True)) + m
    return z - lse


# ----------------------------- Pallas kernel --------------------------------
def _gcn_agg_kernel(counts_ref, kidx_ref, a_ref, xw_ref, b_ref, out_ref,
                    acc_ref, *, activation):
    """One grid step of  out = activation(A_hat @ XW + b).

    grid = (row_tiles, max_nonzero_blocks).  Dim 1 walks the per-row-tile list
    of nonzero A column blocks (scalar-prefetched `kidx`); steps beyond
    `counts[i]` are skipped (their table entries repeat the last valid block
    index so no new DMA is issued either).  Partial products accumulate into a
    f32 VMEM scratch; bias + activation + store happen only on the last step.
    """
    del kidx_ref  # consumed by the index_maps only
    i = pl.program_id(0)
    j = pl.program_id(1)
    # counts[i] can be 0 for fully padded row tiles; their A rows are zero, so
    # running step 0 anyway just writes a zero accumulator (correct).
    n_valid = jnp.maximum(counts_ref[i], 1)

    @pl.when(j < n_valid)
    def _accumulate():
        part = jnp.dot(a_ref[...], xw_ref[...],
                       preferred_element_type=jnp.float32)

        @pl.when(j == 0)
        def _first():          # assign directly: no zero-fill + add
            acc_ref[...] = part

        @pl.when(j > 0)
        def _rest():
            acc_ref[...] += part

    @pl.when(j == pl.num_programs(1) - 1)
    def _finalize():
        z = acc_ref[...] + b_ref[...]      # bias only once, in the epilogue
        out_ref[...] = activation(z).astype(out_ref.dtype)


def _gcn_aggregate(a_p, xw_p, b_p, counts, kidx, *, activation, out_dtype,
                   tm, tk):
    """activation(A_hat @ XW + b) for pre-padded bf16 A_hat / XW."""
    n_pad = a_p.shape[0]
    h = xw_p.shape[1]
    assert n_pad % tm == 0 and n_pad % tk == 0
    assert xw_p.shape[0] == n_pad and counts.shape[0] == n_pad // tm
    max_blocks = kidx.shape[1]

    kernel = functools.partial(_gcn_agg_kernel, activation=activation)

    # VMEM budget (re-derived after hoisting XW; small enough for v7x 64 MiB).
    out_bytes = jnp.dtype(out_dtype).itemsize
    need = (2 * tm * tk * 2          # A tile, double-buffered, bf16
            + 2 * tk * h * 2         # XW tile, double-buffered, bf16
            + 2 * tm * h * out_bytes  # output tile, double-buffered
            + 2 * h * 4              # bias
            + tm * h * 4)            # f32 accumulator scratch
    vmem_limit = min(max(4 * need, 16 * 1024 * 1024), 48 * 1024 * 1024)

    return pl.pallas_call(
        kernel,
        out_shape=jax.ShapeDtypeStruct((n_pad, h), out_dtype),
        grid_spec=pltpu.PrefetchScalarGridSpec(
            num_scalar_prefetch=2,                 # counts, kidx -> SMEM
            grid=(n_pad // tm, max_blocks),
            in_specs=[
                # A_hat row tile i, nonzero column block kidx[i, j]
                pl.BlockSpec((tm, tk), lambda i, j, counts, kidx: (i, kidx[i, j])),
                # matching rows of the precomputed XW
                pl.BlockSpec((tk, h), lambda i, j, counts, kidx: (kidx[i, j], 0)),
                # full bias row
                pl.BlockSpec((1, h), lambda i, j, counts, kidx: (0, 0)),
            ],
            out_specs=pl.BlockSpec((tm, h), lambda i, j, counts, kidx: (i, 0)),
            scratch_shapes=[pltpu.VMEM((tm, h), jnp.float32)],
        ),
        compiler_params=pltpu.CompilerParams(
            dimension_semantics=("parallel", "arbitrary"),
            vmem_limit_bytes=int(vmem_limit),
        ),
    )(counts, kidx, a_p, xw_p, b_p)


# --------------------------- Block-sparsity table -----------------------------
def _build_block_table(a_hat, n_pad, tm, tk):
    """Per-row-tile list of nonzero (tm, tk) column blocks of padded A_hat."""
    n = a_hat.shape[0]
    a_np = np.zeros((n_pad, n_pad), np.float32)
    a_np[:n, :n] = np.asarray(a_hat, dtype=np.float32)
    rt, kt = n_pad // tm, n_pad // tk
    occ = (a_np.reshape(rt, tm, kt, tk) != 0.0).any(axis=(1, 3))   # (rt, kt)
    counts = occ.sum(axis=1).astype(np.int32)
    max_blocks = max(int(counts.max()), 1)
    kidx = np.zeros((rt, max_blocks), dtype=np.int32)
    for i in range(rt):
        nz = np.flatnonzero(occ[i]).astype(np.int32)
        if nz.size:
            kidx[i, :nz.size] = nz
            # Pad with the last valid block index so skipped steps keep the
            # same block index -> Pallas issues no redundant DMA for them.
            kidx[i, nz.size:] = nz[-1]
    return jnp.asarray(counts), jnp.asarray(kidx), max_blocks


# ------------------------------ Forward pass ---------------------------------
def gcn_forward(a_hat, x, w1, b1, w2, b2, *, tm=256, tk=256):
    """2-layer GCN forward (eval): log_softmax(A relu(A X W1 + b1) W2 + b2)."""
    n, _ = x.shape
    hid = w1.shape[1]
    c = w2.shape[1]

    step = math.lcm(tm, tk)
    n_pad = _round_up(n, step)
    # v7x megacore: keep an even number of row tiles so the "parallel" row
    # axis shards evenly across the two TensorCores.
    if (n_pad // tm) % 2 != 0 and (step // tm) % 2 != 0:
        n_pad += step

    h_pad = _round_up(hid, 128)
    c_pad = _round_up(c, 128)

    # Padded bf16 adjacency (streamed operand) + block-sparsity tables.
    a_p = jnp.zeros((n_pad, n_pad), jnp.bfloat16).at[:n, :n].set(
        a_hat.astype(jnp.bfloat16))
    counts, kidx, _ = _build_block_table(a_hat, n_pad, tm, tk)

    # ---- Layer 1: GCNConv(F_in -> H) + ReLU ----
    # Hoisted XW: computed once in f32, cast to bf16 once.
    xw1 = jnp.dot(x.astype(jnp.float32), w1.astype(jnp.float32),
                  preferred_element_type=jnp.float32)
    xw1_p = jnp.zeros((n_pad, h_pad), jnp.bfloat16).at[:n, :hid].set(
        xw1.astype(jnp.bfloat16))
    b1_p = jnp.zeros((1, h_pad), jnp.float32).at[0, :hid].set(
        b1.reshape(-1).astype(jnp.float32))

    h1 = _gcn_aggregate(a_p, xw1_p, b1_p, counts, kidx,
                        activation=_relu, out_dtype=jnp.bfloat16, tm=tm, tk=tk)

    # F.dropout(x, training=self.training): identity in eval / inference mode.
    # TODO(synk): training-mode dropout (pltpu.prng_*) not emitted here.

    # ---- Layer 2: GCNConv(H -> C) + log_softmax(dim=1) ----
    w2_p = jnp.zeros((h_pad, c_pad), jnp.bfloat16).at[:hid, :c].set(
        w2.astype(jnp.bfloat16))
    xw2_p = jnp.dot(h1, w2_p, preferred_element_type=jnp.float32).astype(
        jnp.bfloat16)
    # Padded class lanes get a huge negative bias so they vanish in the
    # log_softmax epilogue (safe because layer-2 output is f32).
    b2_p = jnp.full((1, c_pad), -1e30, jnp.float32).at[0, :c].set(
        b2.reshape(-1).astype(jnp.float32))

    z = _gcn_aggregate(a_p, xw2_p, b2_p, counts, kidx,
                       activation=_log_softmax, out_dtype=jnp.float32,
                       tm=tm, tk=tk)
    return z[:n, :c]


# ------------------------------ JAX glue --------------------------------------
def build_normalized_adjacency(edge_src, edge_dst, n):
    """Dense D^-1/2 (A + I) D^-1/2 from an edge list (GCNConv normalization)."""
    a = jnp.zeros((n, n), jnp.float32).at[edge_dst, edge_src].set(1.0)
    a = jnp.maximum(a, a.T)                               # undirected graph
    a = jnp.where(jnp.eye(n, dtype=bool), 1.0, a)         # add self-loops
    deg = jnp.sum(a, axis=1)
    dinv = 1.0 / jnp.sqrt(deg)
    return dinv[:, None] * a * dinv[None, :]


def gcn_reference(a_hat, x, w1, b1, w2, b2):
    h = jnp.maximum(a_hat @ (x @ w1) + b1.reshape(1, -1), 0.0)
    z = a_hat @ (h @ w2) + b2.reshape(1, -1)
    return jax.nn.log_softmax(z, axis=1)


if __name__ == "__main__":
    # Planetoid-like shapes (features -> hidden 16 -> 7 classes), small but
    # big enough to exercise the (row, k) tiling, the block-sparsity skipping
    # (grid dim 1 = 2 nonzero blocks instead of 4 dense ones) and row padding
    # (N = 1000 -> n_pad = 1024 at tm = tk = 256).
    N, F_IN, HID, C = 1000, 96, 16, 7
    COMM_BOUNDS = [(0, 256), (256, 512), (512, 768), (768, N)]

    key = jax.random.PRNGKey(0)
    k_edges, k_cross, k_x, k_w1, k_b1, k_w2, k_b2 = jax.random.split(key, 7)

    # Block-structured random graph: edges inside each community plus a few
    # cross edges between communities 0 and 1 only -> A_hat is block sparse.
    srcs, dsts = [], []
    ekeys = jax.random.split(k_edges, len(COMM_BOUNDS) * 2)
    for ci, (lo, hi) in enumerate(COMM_BOUNDS):
        srcs.append(jax.random.randint(ekeys[2 * ci], (256,), lo, hi))
        dsts.append(jax.random.randint(ekeys[2 * ci + 1], (256,), lo, hi))
    kc0, kc1 = jax.random.split(k_cross)
    srcs.append(jax.random.randint(kc0, (64,), 0, 256))
    dsts.append(jax.random.randint(kc1, (64,), 256, 512))
    edge_src = jnp.concatenate(srcs)
    edge_dst = jnp.concatenate(dsts)

    a_hat = build_normalized_adjacency(edge_src, edge_dst, N)
    x = jax.random.normal(k_x, (N, F_IN), jnp.float32)

    # Deterministic glorot-style parameter init (GCNConv weight + bias shapes).
    w1 = jax.random.normal(k_w1, (F_IN, HID), jnp.float32) * (1.0 / jnp.sqrt(F_IN))
    b1 = 0.01 * jax.random.normal(k_b1, (HID,), jnp.float32)
    w2 = jax.random.normal(k_w2, (HID, C), jnp.float32) * (1.0 / jnp.sqrt(HID))
    b2 = 0.01 * jax.random.normal(k_b2, (C,), jnp.float32)

    out = gcn_forward(a_hat, x, w1, b1, w2, b2, tm=256, tk=256)
    out = jax.block_until_ready(out)

    # Sanity: shape, finiteness, log_softmax rows exp-sum to ~1, and close to
    # a pure-JAX f32 reference (loose tolerance for the bf16 A_hat stream).
    ref = gcn_reference(a_hat, x, w1, b1, w2, b2)
    row_sums = jnp.sum(jnp.exp(out), axis=1)
    assert out.shape == (N, C)
    assert bool(jnp.all(jnp.isfinite(out)))
    assert bool(jnp.all(jnp.abs(row_sums - 1.0) < 1e-3))
    assert bool(jnp.max(jnp.abs(out - ref)) < 0.25)

    print("KERNEL_OK")
</pallas_src>

<mosaic_0001>
module attributes {stable_mosaic.version = 11 : i64} {
  func.func @_gcn_agg_kernel(%arg0: i32, %arg1: i32, %arg2: memref<4xi32, #tpu.memory_space<smem>>, %arg3: memref<4x2xi32, #tpu.memory_space<smem>>, %arg4: memref<256x256xbf16, #tpu.memory_space<vmem>>, %arg5: memref<256x128xbf16, #tpu.memory_space<vmem>>, %arg6: memref<1x128xf32, #tpu.memory_space<vmem>>, %arg7: memref<256x128xbf16, #tpu.memory_space<vmem>>, %arg8: memref<256x128xf32, #tpu.memory_space<vmem>>) attributes {dimension_semantics = [#tpu.dimension_semantics<parallel>, #tpu.dimension_semantics<arbitrary>], iteration_bounds = array<i64: 4, 2>, scalar_prefetch = 2 : i64, scratch_operands = 1 : i64, tpu.core_type = #tpu.core_type<tc>, window_params = [{transform_indices = @transform_0, window_bounds = array<i64: 256, 256>}, {transform_indices = @transform_1, window_bounds = array<i64: 256, 128>}, {pipeline_mode = #tpu.pipeline_mode<synchronous>, transform_indices = @transform_2, window_bounds = array<i64: 1, 128>}, {transform_indices = @transform_3, window_bounds = array<i64: 256, 128>}]} {
    %0 = arith.index_cast %arg0 : i32 to index
    %1 = memref.load %arg2[%0] : memref<4xi32, #tpu.memory_space<smem>>
    %c1_i32 = arith.constant 1 : i32
    %2 = arith.maxsi %1, %c1_i32 : i32
    %3 = arith.cmpi slt, %arg1, %2 : i32
    %4 = arith.extui %3 : i1 to i32
    %c0_i32 = arith.constant 0 : i32
    %5 = arith.cmpi ne, %4, %c0_i32 : i32
    scf.if %5 {
      %c0 = arith.constant 0 : index
      %c0_2 = arith.constant 0 : index
      %9 = vector.load %arg4[%c0, %c0_2] : memref<256x256xbf16, #tpu.memory_space<vmem>>, vector<256x256xbf16>
      %c0_3 = arith.constant 0 : index
      %c0_4 = arith.constant 0 : index
      %10 = vector.load %arg5[%c0_3, %c0_4] : memref<256x128xbf16, #tpu.memory_space<vmem>>, vector<256x128xbf16>
      %cst = arith.constant dense<0.000000e+00> : vector<256x128xf32>
      %11 = tpu.matmul %9, %10, %cst {dimension_numbers = #tpu.dot_dimension_numbers<[1], [0], [0], [1], [0, 0, 1, 1], [], []>} : vector<256x256xbf16>, vector<256x128xbf16>, vector<256x128xf32> -> vector<256x128xf32>
      %c0_i32_5 = arith.constant 0 : i32
      %12 = arith.cmpi eq, %arg1, %c0_i32_5 : i32
      %13 = arith.extui %12 : i1 to i32
      %c0_i32_6 = arith.constant 0 : i32
      %14 = arith.cmpi ne, %13, %c0_i32_6 : i32
      scf.if %14 {
        %c0_9 = arith.constant 0 : index
        %c0_10 = arith.constant 0 : index
        %18 = vector.load %arg8[%c0_9, %c0_10] : memref<256x128xf32, #tpu.memory_space<vmem>>, vector<256x128xf32>
        tpu.vector_store %arg8[%c0_9, %c0_10], %11 {strides = array<i32>} : memref<256x128xf32, #tpu.memory_space<vmem>>, vector<256x128xf32>,
      } else {
      }
      %c0_i32_7 = arith.constant 0 : i32
      %15 = arith.cmpi sgt, %arg1, %c0_i32_7 : i32
      %16 = arith.extui %15 : i1 to i32
      %c0_i32_8 = arith.constant 0 : i32
      %17 = arith.cmpi ne, %16, %c0_i32_8 : i32
      scf.if %17 {
        %c0_9 = arith.constant 0 : index
        %c0_10 = arith.constant 0 : index
        %18 = vector.load %arg8[%c0_9, %c0_10] : memref<256x128xf32, #tpu.memory_space<vmem>>, vector<256x128xf32>
        %19 = arith.addf %18, %11 : vector<256x128xf32>
        %c0_11 = arith.constant 0 : index
        %c0_12 = arith.constant 0 : index
        %20 = vector.load %arg8[%c0_11, %c0_12] : memref<256x128xf32, #tpu.memory_space<vmem>>, vector<256x128xf32>
        tpu.vector_store %arg8[%c0_11, %c0_12], %19 {strides = array<i32>} : memref<256x128xf32, #tpu.memory_space<vmem>>, vector<256x128xf32>,
      } else {
      }
    } else {
    }
    %c1_i32_0 = arith.constant 1 : i32
    %6 = arith.cmpi eq, %arg1, %c1_i32_0 : i32
    %7 = arith.extui %6 : i1 to i32
    %c0_i32_1 = arith.constant 0 : i32
    %8 = arith.cmpi ne, %7, %c0_i32_1 : i32
    scf.if %8 {
      %c0 = arith.constant 0 : index
      %c0_2 = arith.constant 0 : index
      %9 = vector.load %arg8[%c0, %c0_2] : memref<256x128xf32, #tpu.memory_space<vmem>>, vector<256x128xf32>
      %c0_3 = arith.constant 0 : index
      %c0_4 = arith.constant 0 : index
      %10 = vector.load %arg6[%c0_3, %c0_4] : memref<1x128xf32, #tpu.memory_space<vmem>>, vector<1x128xf32>
      %11 = vector.broadcast %10 : vector<1x128xf32> to vector<256x128xf32>
      %12 = arith.addf %9, %11 : vector<256x128xf32>
      %cst = arith.constant 0.000000e+00 : f32
      %13 = vector.broadcast %cst : f32 to vector<256x128xf32>
      %14 = arith.maximumf %12, %13 : vector<256x128xf32>
      %15 = arith.truncf %14 : vector<256x128xf32> to vector<256x128xbf16>
      %c0_5 = arith.constant 0 : index
      %c0_6 = arith.constant 0 : index
      %16 = vector.load %arg7[%c0_5, %c0_6] : memref<256x128xbf16, #tpu.memory_space<vmem>>, vector<256x128xbf16>
      tpu.vector_store %arg7[%c0_5, %c0_6], %15 {strides = array<i32>} : memref<256x128xbf16, #tpu.memory_space<vmem>>, vector<256x128xbf16>,
    } else {
    }
    return
  }
  func.func @transform_0(%arg0: i32, %arg1: i32, %arg2: memref<4xi32, #tpu.memory_space<smem>>, %arg3: memref<4x2xi32, #tpu.memory_space<smem>>) -> (i32, i32) {
    %0 = arith.index_cast %arg0 : i32 to index
    %1 = arith.index_cast %arg1 : i32 to index
    %2 = memref.load %arg3[%0, %1] : memref<4x2xi32, #tpu.memory_space<smem>>
    %c0_i32 = arith.constant 0 : i32
    return %arg0, %2 : i32, i32
  }
  func.func @transform_1(%arg0: i32, %arg1: i32, %arg2: memref<4xi32, #tpu.memory_space<smem>>, %arg3: memref<4x2xi32, #tpu.memory_space<smem>>) -> (i32, i32) {
    %0 = arith.index_cast %arg0 : i32 to index
    %1 = arith.index_cast %arg1 : i32 to index
    %2 = memref.load %arg3[%0, %1] : memref<4x2xi32, #tpu.memory_space<smem>>
    %c0_i32 = arith.constant 0 : i32
    %c0_i32_0 = arith.constant 0 : i32
    return %2, %c0_i32 : i32, i32
  }
  func.func @transform_2(%arg0: i32, %arg1: i32, %arg2: memref<4xi32, #tpu.memory_space<smem>>, %arg3: memref<4x2xi32, #tpu.memory_space<smem>>) -> (i32, i32) {
    %c0_i32 = arith.constant 0 : i32
    %c0_i32_0 = arith.constant 0 : i32
    %c0_i32_1 = arith.constant 0 : i32
    return %c0_i32, %c0_i32_0 : i32, i32
  }
  func.func @transform_3(%arg0: i32, %arg1: i32, %arg2: memref<4xi32, #tpu.memory_space<smem>>, %arg3: memref<4x2xi32, #tpu.memory_space<smem>>) -> (i32, i32) {
    %c0_i32 = arith.constant 0 : i32
    %c0_i32_0 = arith.constant 0 : i32
    return %arg0, %c0_i32 : i32, i32
  }
}

</mosaic_0001>

<bundles_post_ra>
// kernel: tpu_custom_call.1
= control target key start
LH: loop header
LB: loop body
LE: loop exit
PB: predicated region body
PF: predicated region fallthrough
CT: control target
= control target key end

     0   :  { %s2935_s0 = inlined_call_operand.hbm [shape: s32[4], index: 0, kind: input, shape index: {}]   ;;  %s2936_s2 = inlined_call_operand.hbm [shape: bf16[1024,1024], index: 2, kind: input, shape index: {}]   ;;  %s2937_s3 = inlined_call_operand.hbm [shape: bf16[1024,128], index: 3, kind: input, shape index: {}]   ;;  %s2938_s4 = inlined_call_operand.hbm [shape: f32[1,128], index: 4, kind: input, shape index: {}]   ;;  %s2939_s5 = inlined_call_operand.hbm [shape: bf16[1024,128], index: 5, kind: output, shape index: {}]   ;;  %s2940_s1 = inlined_call_operand.vmem [shape: s32[4,2], index: 1, kind: input, shape index: {}]  }
   0x1   :  { %2965 = sst [smem:[#allocation35_spill]] %s2938_s4  ;;  %s1956_s20 = scalar_lea.hbm %s2935_s0, 16 }
   0x2   :  { %2966 = sst [smem:[#allocation36_spill]] %s2939_s5  ;;  %p1957_p0 = scmp.ne.s32.totalorder %s2935_s0, %s1956_s20 }
   0x3   :  { %p1960_p1 = scmp.lt.u32.totalorder %s1956_s20, %s2935_s0 }
   0x5   :  { %p1962_p2 = pnand %p1960_p1, %p1957_p0 }
   0x7   :  { %1965 = shalt.err (!%p1962_p2)  }
   0x8   :  { %s2224_s25 = smov [#allocation4]   ;;  %s12_s30 = sshll.u32 %s2940_s1, 4  ;;  %s13_s30 = int_to_ptr.vmem [resolvable:$true] %s12_s30 }
   0x9   :  { %11 = dma.hbm_to_smem %s2935_s0, 16, %s2224_s25, [#allocation3] }
   0xa   :  { %s1966_s6 = scalar_lea.vmem %s13_s30, 64  ;;  %p1971_p4 = scmp.lt.s32.totalorder %s13_s30, %s13_s30 }
   0xb   :  { %p1967_p3 = scmp.ne.s32.totalorder %s13_s30, %s1966_s6  ;;  %p1972_p5 = scmp.lt.s32.totalorder %s1966_s6, %s1966_s6 }
   0xd   :  { %p1973_p6 = por %p1972_p5, %p1971_p4 }
   0xf   :  { %p1974_p7 = pnand %p1973_p6, %p1967_p3 }
  0x11   :  { %1977 = shalt.err (!%p1974_p7)  }
  0x12   :  { %s2225_s7 = smov [#allocation5]  }
  0x13   :  { %15 = dma.vmem_to_smem %s13_s30, 64, %s2225_s7, [#allocation3] }
  0x14   :  { %2150 = dma.done.wait [#allocation3], 80 }
  0x15   :  { %2151 = vsyncadd [#allocation3], 4294967216 }
  0x16   :  { %17 = sfence }
  0x17   :  { %18 = vsyncpa [#allocation7], 0 }
  0x18   :  { %20 = vsyncpa [#allocation7 + $0x1], 0 }
  0x19   :  { %21 = vsyncpa [#allocation10], 0 }
  0x1a   :  { %23 = vsyncpa [#allocation10 + $0x1], 0 }
  0x1b   :  { %24 = vsyncpa [#allocation8], 0 }
  0x1c   :  { %26 = vsyncpa [#allocation8 + $0x1], 0  ;;  %s2282_s0 = smov 0   ;;  %s2284_s1 = smov 0  }
  0x1d   :  { %s2286_s8 = smov 0   ;;  %s2288_s9 = smov 0  }
  0x1e   :  { %s2290_s10 = smov 0   ;;  %s2292_s11 = smov 0  }
  0x1f   :  { %s2294_s12 = smov 0   ;;  %s2296_s13 = smov 0  }
  0x20   :  { %s2298_s14 = smov 0   ;;  %s2300_s15 = smov 0  }
  0x21   :  { %s2302_s16 = smov 0   ;;  %s2304_s17 = smov 0  }
  0x22   :  { %s2306_s18 = smov 0   ;;  %s2308_s19 = smov 0  }
  0x23 LB: > { %2967 = sst [smem:[#allocation22_spill]] %s2170_s0  ;;  %s41_s20 = sadd.s32 1, %s2214_s17  ;;  %s2222_s19 = sphi %s2308_s19, %s32_s19   ;;  %s2218_s18 = sphi %s2306_s18, %s3042_s18   ;;  %s2214_s17 = sphi %s2304_s17, %s3032_s17   ;;  %s2210_s16 = sphi %s2302_s16, %s3041_s16   ;;  %s2206_s15 = sphi %s2300_s15, %s3031_s15   ;;  %s2202_s14 = sphi %s2298_s14, %s3040_s14   ;;  %s2198_s13 = sphi %s2296_s13, %s3039_s13   ;;  %s2194_s12 = sphi %s2294_s12, %s3038_s12   ;;  %s2190_s11 = sphi %s2292_s11, %s3037_s11   ;;  %s2186_s10 = sphi %s2290_s10, %s3036_s10   ;;  %s2182_s9 = sphi %s2288_s9, %s3035_s9   ;;  %s2178_s8 = sphi %s2286_s8, %s3028_s8   ;;  %s2174_s1 = sphi %s2284_s1, %s3027_s1   ;;  %s2170_s0 = sphi %s2282_s0, %s3026_s0  }
  0x24   : > { %2968 = sst [smem:[#allocation23_spill]] %s2174_s1  ;;  %s44_s21 = sadd.s32 1, %s2218_s18 }
  0x25   : > { %2969 = sst [smem:[#allocation24_spill]] %s2178_s8  ;;  %p42_p8 = scmp.ge.s32.totalorder %s41_s20, 2 }
  0x26   : > { %2970 = sst [smem:[#allocation25_spill]] %s2206_s15  ;;  %s48_s22 = sshra.s32 %s2214_s17, 7 }
  0x27   : > { %2971 = sst [smem:[#allocation26_spill]] %s2210_s16  ;;  %s50_s23 = sadd.s32 %s2218_s18, %s48_s22 }
  0x28   : > { %2972 = sst [smem:[#allocation27_spill]] %s2214_s17  ;;  %s53_s24 = sand.u32 127, %s2214_s17 }
  0x29   : > { %s3044_s20 = smov (%p42_p8, %s41_s20), 0  ;;  %s3046_s21 = smov (!%p42_p8, %s44_s21), %s2218_s18 }
  0x2a   : > { %2973 = sst [smem:[#allocation28_spill]] %s3044_s20  ;;  %s2361_s25 = sadd.s32 4294967295, %s2222_s19  }
  0x2b   : > { %s1363_s26 = sshll.u32 %s50_s23, 7  ;;  %p46_p9 = scmp.ge.s32.totalorder %s3046_s21, 4 }
  0x2c   : > { %s2364_s28 = sadd.s32 %s1363_s26, %s53_s24  ;;  %s56_s29 = sshra.s32 %s3044_s20, 7 }
  0x2d   : > { %s3048_s21 = smov (%p46_p9, %s3046_s21), 0  ;;  %s55_s30 = sld [smem:[#allocation5 + %s2364_s28]] }
  0x2e   : > { %2974 = sst [smem:[#allocation29_spill]] %s3048_s21  ;;  %s61_s6 = sand.u32 127, %s3044_s20 }
  0x2f   : > { %s58_s7 = sadd.s32 %s56_s29, %s3048_s21  ;;  %s69_s22 = sadd.s32 1, %s2202_s14 }
  0x30   : > { %s1364_s23 = sshll.u32 %s58_s7, 7  ;;  %p76_p10 = scmp.ne.s32.totalorder %s2202_s14, %s2198_s13 }
  0x31   : > { %s62_s24 = sadd.s32 %s1364_s23, %s61_s6  ;;  %p82_p11 = scmp.ne.s32.totalorder %s2198_s13, %s2194_s12 }
  0x32   : > { %s63_s26 = sld [smem:[#allocation5 + %s62_s24]]  ;;  %s64_s27 = ssub.s32 %s2218_s18, %s3048_s21 }
  0x33   : > { %p2944_p12 = scmp.eq.s32.totalorder %s2361_s25, 0  ;;  %s99_s17 = sld [smem:[#allocation5 + %s2364_s28]] }
  0x34   : > { %s107_s20 = sld [smem:[#allocation5 + %s62_s24]]  ;;  %s111_s7 = sadd.s32 1, %s2190_s11 }
  0x35   : > { %p2384_p0 = por %p2944_p12, %p82_p11  ;;  %p124_p2 = scmp.ne.s32.totalorder %s2186_s10, %s2182_s9 }
  0x36   : > { %p156_p3 = scmp.eq.s32.totalorder %s64_s27, 0  ;;  %s158_s12 = sadd.s32 1, %s2178_s8 }
  0x37   : > { %s2975_s29 = scalar_select %p2384_p0, 1, 0 }
  0x38   : > { %s65_s6 = ssub.s32 %s55_s30, %s63_s26  ;;  %p2396_p4 = por %p124_p2, %p2944_p12 }
  0x39   : > { %s66_s24 = sor.u32 %s65_s6, %s64_s27  ;;  %p168_p5 = scmp.ne.s32.totalorder %s2178_s8, %s2174_s1 }
  0x3a   : > { %s2976_s23 = scalar_select %p2396_p4, 1, 0 }
  0x3b   : > { %p67_p6 = scmp.eq.s32.totalorder %s66_s24, 0  ;;  %s108_s21 = ssub.s32 %s99_s17, %s107_s20 }
  0x3c   : > { %p109_p7 = scmp.eq.s32.totalorder %s108_s21, 0  ;;  %p169_p8 = scmp.eq.s32.totalorder %s2361_s25, 7 }
  0x3d   : > { %s2404_s9 = scalar_select %p67_p6, %s2202_s14, %s69_s22  }
  0x3e   : > { %s2407_s30 = scalar_select %p109_p7, %s2190_s11, %s111_s7  }
  0x3f   : > { %2977 = sst [smem:[#allocation30_spill]] %s2404_s9  ;;  %p2412_p9 = por %p169_p8, %p168_p5 }
  0x40   : > { %2978 = sst [smem:[#allocation31_spill]] %s2407_s30  ;;  %p174_p11 = scmp.ne.s32.totalorder %s2174_s1, %s2170_s0 }
  0x41   : > { %s2410_s26 = scalar_select %p156_p3, %s2178_s8, %s158_s12  }
  0x42   : > { %s2980_s27 = scalar_select %p2412_p9, 1, 0 }
  0x43   : > { %2979 = sst [smem:[#allocation32_spill]] %s2410_s26  ;;  %s2982_s17 = sadd.s32 4294967294, %s2222_s19  }
  0x44   : > { %2981 = sst [smem:[#allocation33_spill]] %s2980_s27  ;;  %p175_p2 = scmp.eq.s32.totalorder %s2982_s17, 7 }
  0x45   : > { %p1367_p12 = scmp.ge.s32.totalorder %s2222_s19, 1  ;;  %p182_p1 = scmp.lt.s32.totalorder %s2222_s19, 9 }
  0x46   : > { %p2422_p13 = por %p175_p2, %p174_p11  ;;  %s2226_s22 = smov [#allocation11]  }
  0x47   : > { %p2426_p6 = pnand %p1367_p12, %p182_p1  ;;  %s195_s7 = sshll.u32 %s2226_s22, 4  ;;  %s196_s7 = int_to_ptr.vmem [resolvable:$true] %s195_s7 }
  0x48   : > { %s2983_s20 = scalar_select %p2422_p13, 1, 0 }
  0x49   : > { %s2985_s21 = scalar_select %p2426_p6, 1, 0 }
  0x4a   : > { %2984 = sst [smem:[#allocation34_spill]] %s2983_s20  ;;  %p2986_p3 = scmp.eq.s32.totalorder %s2222_s19, 0 }
  0x4b   : > { %p1747_p7 = pneg %p2426_p6  ;;  %p2951_p8 = scmp.lt.s32.totalorder %s2222_s19, 8 }
  0x4c   : > { %p2435_p5 = por %p2986_p3, %p76_p10  ;;  %p2988_p11 = pmov %p2986_p3 }
  0x4d   : > { %p2989_p2 = scmp.ne.s32.totalorder %s2190_s11, %s2186_s10  ;;  %p2991_p12 = scmp.eq.s32.totalorder %s2361_s25, 0 }
  0x4e   : > { %s2987_s12 = scalar_select %p2435_p5, 1, 0 }
  0x4f   : > { %p2447_p13 = por %p2989_p2, %p2988_p11  ;;  %p2453_p1 = pnand %p1747_p7, %p2991_p12 }
  0x50   : > { %p2461_p10 = pnand %p2951_p8, %p2435_p5  ;;  %s2962_s9 = sand.u32 1, %s2202_s14  }
  0x51   : > { %s2990_s6 = scalar_select %p2447_p13, 1, 0 }
  0x52   : > { %s2993_s17 = scalar_select %p2461_p10, 1, 0 }
  0x53   : > { %p2469_p3 = pnand %p2951_p8, %p2447_p13  ;;  %s2995_s4 = sld [smem:[#allocation35_spill]] }
  0x54   : > { %p1980_p11 = pneg %p2453_p1 }
  0x55   : > { %s2994_s22 = scalar_select %p2469_p3, 1, 0 }
  0x59   : > { %s1978_s8 = scalar_lea.hbm %s2995_s4, 16 }
  0x5a   : > { %p1979_p7 = scmp.ne.s32.totalorder %s2995_s4, %s1978_s8  ;;  %p1985_p8 = scmp.lt.u32.totalorder %s1978_s8, %s2995_s4 }
  0x5c   : > { %p1981_p2 = pnand %p1980_p11, %p1979_p7 }
  0x5e   : > { %p1982_p12 = pneg %p1981_p2 }
  0x60   : > { %p1987_p9 = pnand %p1985_p8, %p1982_p12 }
  0x62   : > { %1990 = shalt.err (!%p1987_p9)
}
  0x63   : > { %s1991_s15 = scalar_lea.vmem %s196_s7, 16  ;;  %s1998_s30 = scalar_lea.vmem %s196_s7, 32 }
  0x64   : > { %p1992_p4 = scmp.ne.s32.totalorder %s196_s7, %s1991_s15  ;;  %p1999_p3 = scmp.lt.s32.totalorder %s196_s7, %s196_s7 }
  0x65   : > { %p2000_p10 = scmp.lt.s32.totalorder %s1998_s30, %s1991_s15 }
  0x66   : > { %p1994_p0 = pnand %p1992_p4, %p1980_p11 }
  0x67   : > { %p2001_p13 = por %p2000_p10, %p1999_p3 }
  0x68   : > { %p1995_p6 = pneg %p1994_p0 }
  0x6a   : > { %p2002_p5 = pnand %p2001_p13, %p1995_p6 }
  0x6c   : > { %2005 = shalt.err (!%p2002_p5)
}
  0x6d   : > { %1750 = dma.hbm_to_vmem [thread:$0]  (!%p2453_p1), %s2995_s4, 16, %s196_s7, [#allocation10]  }
  0x6e   : > { %s1370_s5 = sshll.u32 %s2962_s9, 8  ;;  %p2996_p0 = scmp.ne.s32.totalorder %s2987_s12, 0 }
  0x6f   : > { %p2997_p13 = scmp.lt.s32.totalorder %s2222_s19, 8  ;;  %s210_s20 = scalar_lea.vmem [#allocation6], %s1370_s5 }
  0x70   : > { %s1735_s8 = scalar_select %p2996_p0, [#allocation5], [#allocation13] }
  0x71   : > { %s1736_s15 = scalar_select %p2996_p0, %s2364_s28, 0 }
  0x72   : > { %s3050_s8 = smov (!%p2997_p13, %s1735_s8), [#allocation15]  ;;  %p2998_p4 = pmov %p2997_p13 }
  0x73   : > { %s228_s24 = sshll.u32 %s210_s20, 4  ;;  %s1475_s30 = sshll.u32 %s2218_s18, 8  ;;  %s2502_s24 = int_to_ptr.vmem [resolvable:$true] %s228_s24 }
  0x74   : > { %s3052_s15 = smov (!%p2998_p4, %s1736_s15), 0  ;;  %p2999_p9 = scmp.ne.s32.totalorder %s2990_s6, 0 }
  0x75   : > { %s218_s27 = sld [smem:[%s3050_s8 + %s3052_s15]]  ;;  %s240_s26 = sand.u32 1, %s2190_s11  }
  0x76   : > { %s1738_s7 = scalar_select %p2999_p9, [#allocation5], [#allocation14] }
  0x77   : > { %s2512_s5 = sshll.u32 %s240_s26, 7  ;;  %s3000_s8 = sand.u32 1, %s2202_s14  }
  0x78   : > { %s2516_s15 = scalar_lea.sflag [#allocation7], %s3000_s8  ;;  %p3001_p5 = scmp.ne.s32.totalorder %s2993_s17, 0 }
  0x7a   : > { %p2008_p8 = pneg %p3001_p5 }
  0x7b   : > { %s1373_s0 = sshll.u32 %s218_s27, 1 }
  0x7c   : > { %s225_s9 = sadd.s32 %s1475_s30, %s1373_s0 }
  0x7d   : > { %s1375_s12 = sshll.u32 %s225_s9, 6  ;;  %s2011_s9 = scalar_lea.hbm %s2936_s2, 65536 }
  0x7e   : > { %s2510_s1 = scalar_lea.hbm %s2936_s2, %s1375_s12 }
  0x7f   : > { %s2006_s20 = scalar_lea.hbm %s2510_s1, 4096  ;;  %p2012_p3 = scmp.lt.u32.totalorder %s2510_s1, %s2936_s2 }
  0x80   : > { %p2007_p6 = scmp.ne.s32.totalorder %s2510_s1, %s2006_s20  ;;  %p2013_p7 = scmp.lt.u32.totalorder %s2011_s9, %s2006_s20 }
  0x81   : > { %p2015_p2 = scmp.lt.u32.totalorder %s2006_s20, %s2510_s1 }
  0x82   : > { %p2009_p1 = pnand %p2008_p8, %p2007_p6  ;;  %p2014_p11 = por %p2013_p7, %p2012_p3 }
  0x84   : > { %p2010_p10 = pneg %p2009_p1  ;;  %p2016_p12 = por %p2015_p2, %p2014_p11 }
  0x86   : > { %p2017_p0 = pnand %p2016_p12, %p2010_p10 }
  0x88   : > { %2020 = shalt.err (!%p2017_p0)
}
  0x89   : > { %s2021_s0 = scalar_lea.vmem %s2502_s24, 4096  ;;  %s2227_s26 = smov [#allocation6]  }
  0x8a   : > { %p2022_p13 = scmp.ne.s32.totalorder %s2502_s24, %s2021_s0  ;;  %s2026_s12 = sshll.u32 %s2227_s26, 4  ;;  %s2027_s12 = int_to_ptr.vmem [resolvable:$false] %s2026_s12 }
  0x8b   : > { %s2028_s8 = scalar_lea.vmem %s2027_s12, 8192  ;;  %p2029_p1 = scmp.lt.s32.totalorder %s2502_s24, %s2027_s12 }
  0x8c   : > { %p2024_p4 = pnand %p2022_p13, %p2008_p8  ;;  %p2030_p3 = scmp.lt.s32.totalorder %s2028_s8, %s2021_s0 }
  0x8e   : > { %p2025_p6 = pneg %p2024_p4  ;;  %p2031_p7 = por %p2030_p3, %p2029_p1 }
  0x90   : > { %p2032_p11 = pnand %p2031_p7, %p2025_p6 }
  0x92   : > { %2035 = shalt.err (!%p2032_p11)
}
  0x93   : > { %s2228_s20 = smov 512   ;;  %s2229_s4 = smov 128  }
  0x94   : > { %s2230_s16 = smov 8   ;;  %s3054_s28 = smov (!%p2999_p9, %s2364_s28), 0 }
  0x95   : > { %1756 = dma.hbm_to_vmem [thread:$0]  (!%p3001_p5), %s2510_s1, 4096, %s2502_s24, %s2516_s15, %s2228_s20, %s2229_s4, %s2230_s16  }
  0x96   : > { %p3002_p8 = scmp.lt.s32.totalorder %s2222_s19, 8  ;;  %s238_s27 = sand.u32 1, %s2222_s19  }
  0x97   : > { %s242_s30 = scalar_lea.vmem [#allocation9], %s2512_s5  ;;  %s2563_s1 = scalar_lea.sflag [#allocation10], %s238_s27 }
  0x98   : > { %s3056_s7 = smov (!%p3002_p8, %s1738_s7), [#allocation16]  ;;  %p3003_p10 = pmov %p3002_p8 }
  0x99   : > { %s257_s0 = sshll.u32 %s242_s30, 4  ;;  %p3004_p5 = scmp.ne.s32.totalorder %s2994_s22, 0  ;;  %s2556_s0 = int_to_ptr.vmem [resolvable:$true] %s257_s0 }
  0x9a   : > { %s3058_s28 = smov (!%p3003_p10, %s3054_s28), 0 }
  0x9b   : > { %s250_s9 = sld [smem:[%s3056_s7 + %s3058_s28]]  ;;  %p2038_p2 = pneg %p3004_p5 }
  0x9c   : > { %s2041_s7 = scalar_lea.hbm %s2937_s3, 8192 }
  0xa1   : > { %s1476_s26 = sshll.u32 %s250_s9, 11 }
  0xa2   : > { %s2561_s17 = scalar_lea.hbm %s2937_s3, %s1476_s26 }
  0xa3   : > { %s2036_s6 = scalar_lea.hbm %s2561_s17, 2048  ;;  %p2042_p13 = scmp.lt.u32.totalorder %s2561_s17, %s2937_s3 }
  0xa4   : > { %p2037_p9 = scmp.ne.s32.totalorder %s2561_s17, %s2036_s6  ;;  %p2043_p4 = scmp.lt.u32.totalorder %s2041_s7, %s2036_s6 }
  0xa5   : > { %p2045_p1 = scmp.lt.u32.totalorder %s2036_s6, %s2561_s17 }
  0xa6   : > { %p2039_p12 = pnand %p2038_p2, %p2037_p9  ;;  %p2044_p6 = por %p2043_p4, %p2042_p13 }
  0xa8   : > { %p2040_p0 = pneg %p2039_p12  ;;  %p2046_p3 = por %p2045_p1, %p2044_p6 }
  0xaa   : > { %p2047_p7 = pnand %p2046_p3, %p2040_p0 }
  0xac   : > { %2050 = shalt.err (!%p2047_p7)
}
  0xad   : > { %s2051_s20 = scalar_lea.vmem %s2556_s0, 2048  ;;  %s2231_s4 = smov [#allocation9]  }
  0xae   : > { %p2052_p11 = scmp.ne.s32.totalorder %s2556_s0, %s2051_s20  ;;  %s2056_s16 = sshll.u32 %s2231_s4, 4  ;;  %s2057_s16 = int_to_ptr.vmem [resolvable:$false] %s2056_s16 }
  0xaf   : > { %s2058_s9 = scalar_lea.vmem %s2057_s16, 4096  ;;  %p2059_p9 = scmp.lt.s32.totalorder %s2556_s0, %s2057_s16 }
  0xb0   : > { %p2054_p8 = pnand %p2052_p11, %p2038_p2  ;;  %p2060_p12 = scmp.lt.s32.totalorder %s2058_s9, %s2051_s20 }
  0xb2   : > { %p2055_p10 = pneg %p2054_p8  ;;  %p2061_p13 = por %p2060_p12, %p2059_p9 }
  0xb4   : > { %p2062_p4 = pnand %p2061_p13, %p2055_p10 }
  0xb6   : > { %2065 = shalt.err (!%p2062_p4)
}
  0xb7   : > { %s2232_s27 = smov 64   ;;  %s2233_s30 = smov 4  }
  0xb8   : > { %1761 = dma.hbm_to_vmem [thread:$0]  (!%p3004_p5), %s2561_s17, 2048, %s2556_s0, %s2563_s1, %s2232_s27, %s2232_s27, %s2233_s30  }
  0xb9   : > { %p3005_p2 = scmp.ne.s32.totalorder %s2985_s21, 0 }
  0xba   : > { %s271_s26 = sand.u32 (!%p3005_p2), 1, %s2198_s13   ;;  %p3006_p0 = scmp.ne.s32.totalorder (!%p3005_p2), %s2975_s29, 0 }
  0xbb   : > { %269 = sbr.rel (%p3005_p2) target bundleno = 613 (0x265), region = 32  ;;  %s1381_s12 = sshll.u32 (!%p3005_p2), %s271_s26, 8 }
  0xbc   : > { %s272_s8 = scalar_lea.sflag (!%p3005_p2), [#allocation7], %s271_s26  ;;  %s2594_s6 = scalar_lea.vmem (!%p3005_p2), [#allocation6], %s1381_s12 }
  0xc2   : > { %2153 = dma.done.wait (%p3006_p0), %s272_s8, 4096  }
  0xc3   : > { %2155 = vsyncadd (%p3006_p0), %s272_s8, 4294963200  ;;  %s280_s22 = sand.u32 1, %s2361_s25   ;;  %s282_s0 = sand.u32 1, %s2186_s10  }
  0xc4   : > { %s1382_s17 = sshll.u32 %s282_s0, 7  ;;  %s281_s21 = scalar_lea.sflag [#allocation10], %s280_s22 }
  0xc5   : > { %s2602_s1 = scalar_lea.vmem [#allocation9], %s1382_s17  ;;  %p3007_p5 = scmp.ne.s32.totalorder %s2976_s23, 0 }
  0xc7   : > { %2157 = dma.done.wait (%p3007_p5), %s281_s21, 2048  }
  0xc8   : > { %2159 = vsyncadd (%p3007_p5), %s281_s21, 4294965248  ;;  %p3008_p6 = scmp.eq.s32.totalorder %s2361_s25, 0 }
  0xca   : > { %2161 = dma.done.wait (%p3008_p6), [#allocation10], 16   ;;  %p3009_p1 = pmov %p3008_p6 }
  0xcb   : > { %s3010_s29 = sld [smem:[#allocation23_spill]]  ;;  %s3011_s28 = sld [smem:[#allocation26_spill]] }
  0xcc   : > { %2163 = vsyncadd (%p3009_p1), [#allocation10], 4294967280  ;;  %s3012_s20 = sld [smem:[#allocation25_spill]] }
  0xd1   : > { %s313_s24 = sand.u32 1, %s3010_s29   ;;  %s337_s7 = sld [smem:[#allocation4 + %s3011_s28]] }
  0xd2   : > { %s1384_s5 = sshll.u32 %s313_s24, 7 }
  0xd3   : > { %s2616_s15 = scalar_lea.vmem [#allocation12], %s1384_s5 }
  0xd7   : > { %p338_p3 = scmp.gt.s32.totalorder %s337_s7, 1 }
  0xd9   : > { %s3060_s7 = smov (!%p338_p3, %s337_s7), 1 }
  0xda   : > { %p1385_p7 = scmp.ge.s32.totalorder %s3012_s20, %s3060_s7 }
  0xdb   : > { %v1892_v0 = vld [vmem:[%s2602_s1 + $0x40] sm:$0xff] (!%p1385_p7)   ;;  %v1894_v2 = vld [vmem:[%s2602_s1 + $0x48] sm:$0xff] (!%p1385_p7)   ;;  %v1896_v4 = vld [vmem:[%s2602_s1 + $0x50] sm:$0xff] (!%p1385_p7)   ;;  %s3013_s25 = sld [smem:[#allocation25_spill]] (!%p1385_p7) }
  0xdc   : > { %343 = sbr.rel (%p1385_p7) target bundleno = 552 (0x228), region = 48  ;;  %v1893_v1 = vld [vmem:[%s2602_s1] sm:$0xff] (!%p1385_p7)   ;;  %1605 = vmatprep.subr.bf16.mxu0 (!%p1385_p7), %v1892_v0  ;;  %1717 = vmatprep.subr.bf16.mxu1 (!%p1385_p7), %v1892_v0  ;;  %v1895_v3 = vld [vmem:[%s2602_s1 + $0x8] sm:$0xff] (!%p1385_p7)   ;;  %v1897_v5 = vld [vmem:[%s2602_s1 + $0x10] sm:$0xff] (!%p1385_p7)  }
  0xdd   : > { %1606 = vmatpush3.bf16.msra.mxu0 (!%p1385_p7), %v1893_v1  ;;  %1725 = vmatpush3.bf16.msra.mxu1 (!%p1385_p7), %v1893_v1  ;;  %v1898_v6 = vld [vmem:[%s2602_s1 + $0x58] sm:$0xff] (!%p1385_p7)   ;;  %v1900_v8 = vld [vmem:[%s2602_s1 + $0x60] sm:$0xff] (!%p1385_p7)   ;;  %v1902_v10 = vld [vmem:[%s2602_s1 + $0x68] sm:$0xff] (!%p1385_p7)  }
  0xde   : > { %1607 = vmatprep.subr.bf16.mxu0 (!%p1385_p7), %v1894_v2  ;;  %1718 = vmatprep.subr.bf16.mxu1 (!%p1385_p7), %v1894_v2  ;;  %v1899_v7 = vld [vmem:[%s2602_s1 + $0x18] sm:$0xff] (!%p1385_p7)   ;;  %v1901_v9 = vld [vmem:[%s2602_s1 + $0x20] sm:$0xff] (!%p1385_p7)   ;;  %v1903_v13 = vld [vmem:[%s2602_s1 + $0x28] sm:$0xff] (!%p1385_p7)  }
  0xdf   : > { %v1910_v11 = vld [vmem:[%s2594_s6 + $0x4] ss:$8 sps:$4 sm:$0xff] (!%p1385_p7)   ;;  %v1904_v14 = vld [vmem:[%s2602_s1 + $0x70] sm:$0xff] (!%p1385_p7)   ;;  %v1906_v16 = vld [vmem:[%s2602_s1 + $0x78] sm:$0xff] (!%p1385_p7)  }
  0xe0   : > { %v1913_v12 = vld [vmem:[%s2594_s6 + $0x84] ss:$8 sps:$4 sm:$0xff] (!%p1385_p7)   ;;  %696 = vmatprep.mubr.bf16.mxu0 (!%p1385_p7), %v1910_v11  ;;  %v1905_v15 = vld [vmem:[%s2602_s1 + $0x30] sm:$0xff] (!%p1385_p7)   ;;  %v1907_v17 = vld [vmem:[%s2602_s1 + $0x38] sm:$0xff] (!%p1385_p7)  }
  0xe1   : > { %1608 = vmatpush3.bf16.msra.mxu0 (!%p1385_p7), %v1895_v3  ;;  %1726 = vmatpush3.bf16.msra.mxu1 (!%p1385_p7), %v1895_v3  ;;  %v1908_v18 = vld [vmem:[%s2594_s6] ss:$8 sps:$4 sm:$0xff] (!%p1385_p7)   ;;  %v1914_v20 = vld [vmem:[%s2594_s6 + $0x14] ss:$8 sps:$4 sm:$0xff] (!%p1385_p7)   ;;  %v1918_v22 = vld [vmem:[%s2594_s6 + $0x10] ss:$8 sps:$4 sm:$0xff] (!%p1385_p7)  }
  0xe2   : > { %1609 = vmatprep.subr.bf16.mxu0 (!%p1385_p7), %v1896_v4  ;;  %1719 = vmatprep.subr.bf16.mxu1 (!%p1385_p7), %v1896_v4  ;;  %v1911_v19 = vld [vmem:[%s2594_s6 + $0x80] ss:$8 sps:$4 sm:$0xff] (!%p1385_p7)   ;;  %v1916_v21 = vld [vmem:[%s2594_s6 + $0x94] ss:$8 sps:$4 sm:$0xff] (!%p1385_p7)   ;;  %v1919_v23 = vld [vmem:[%s2594_s6 + $0x90] ss:$8 sps:$4 sm:$0xff] (!%p1385_p7)  }
  0xe3   : > { %760 = vmatprep.mubr.bf16.mxu1 %v1913_v12  ;;  %v1920_v24 = vld [vmem:[%s2594_s6 + $0x24] ss:$8 sps:$4 sm:$0xff]   ;;  %v1924_v26 = vld [vmem:[%s2594_s6 + $0x20] ss:$8 sps:$4 sm:$0xff]   ;;  %v1926_v28 = vld [vmem:[%s2594_s6 + $0x34] ss:$8 sps:$4 sm:$0xff]  }
  0xe4   : > { %v1922_v25 = vld [vmem:[%s2594_s6 + $0xa4] ss:$8 sps:$4 sm:$0xff]   ;;  %v1925_v27 = vld [vmem:[%s2594_s6 + $0xa0] ss:$8 sps:$4 sm:$0xff]   ;;  %v1928_v29 = vld [vmem:[%s2594_s6 + $0xb4] ss:$8 sps:$4 sm:$0xff]  }
  0xe5   : > { %1610 = vmatpush3.bf16.msra.mxu0 %v1897_v5  ;;  %1727 = vmatpush3.bf16.msra.mxu1 %v1897_v5  ;;  %v1930_v30 = vld [vmem:[%s2594_s6 + $0x30] ss:$8 sps:$4 sm:$0xff]   ;;  %v1932_v32 = vld [vmem:[%s2594_s6 + $0x44] ss:$8 sps:$4 sm:$0xff]   ;;  %v1936_v34 = vld [vmem:[%s2594_s6 + $0x40] ss:$8 sps:$4 sm:$0xff]  }
  0xe6   : > { %1611 = vmatprep.subr.bf16.mxu0 %v1898_v6  ;;  %1720 = vmatprep.subr.bf16.mxu1 %v1898_v6  ;;  %v1931_v31 = vld [vmem:[%s2594_s6 + $0xb0] ss:$8 sps:$4 sm:$0xff]   ;;  %v1934_v33 = vld [vmem:[%s2594_s6 + $0xc4] ss:$8 sps:$4 sm:$0xff]   ;;  %v1937_v35 = vld [vmem:[%s2594_s6 + $0xc0] ss:$8 sps:$4 sm:$0xff]  }
  0xe7   : > { %v1938_v36 = vld [vmem:[%s2594_s6 + $0x54] ss:$8 sps:$4 sm:$0xff]   ;;  %v1942_v38 = vld [vmem:[%s2594_s6 + $0x50] ss:$8 sps:$4 sm:$0xff]   ;;  %v1944_v40 = vld [vmem:[%s2594_s6 + $0x64] ss:$8 sps:$4 sm:$0xff]  }
  0xe8   : > { %v1940_v37 = vld [vmem:[%s2594_s6 + $0xd4] ss:$8 sps:$4 sm:$0xff]   ;;  %v1943_v39 = vld [vmem:[%s2594_s6 + $0xd0] ss:$8 sps:$4 sm:$0xff]   ;;  %v1946_v41 = vld [vmem:[%s2594_s6 + $0xe4] ss:$8 sps:$4 sm:$0xff]  }
  0xe9   : > { %1612 = vmatpush3.bf16.msra.mxu0 %v1899_v7  ;;  %1728 = vmatpush3.bf16.msra.mxu1 %v1899_v7  ;;  %v1948_v42 = vld [vmem:[%s2594_s6 + $0x60] ss:$8 sps:$4 sm:$0xff]   ;;  %v1950_v44 = vld [vmem:[%s2594_s6 + $0x74] ss:$8 sps:$4 sm:$0xff]   ;;  %v1954_v46 = vld [vmem:[%s2594_s6 + $0x70] ss:$8 sps:$4 sm:$0xff]  }
  0xea   : > { %1613 = vmatprep.subr.bf16.mxu0 %v1900_v8  ;;  %1721 = vmatprep.subr.bf16.mxu1 %v1900_v8  ;;  %v1949_v43 = vld [vmem:[%s2594_s6 + $0xe0] ss:$8 sps:$4 sm:$0xff]   ;;  %v1952_v45 = vld [vmem:[%s2594_s6 + $0xf4] ss:$8 sps:$4 sm:$0xff]   ;;  %v1955_v47 = vld [vmem:[%s2594_s6 + $0xf0] ss:$8 sps:$4 sm:$0xff]  }
  0xeb   : > { %p1434_p11 = scmp.ne.s32.totalorder %s3013_s25, 0 }
  0xed   : > { %1614 = vmatpush3.bf16.msra.mxu0 %v1901_v9  ;;  %1729 = vmatpush3.bf16.msra.mxu1 %v1901_v9 }
  0xee   : > { %1615 = vmatprep.subr.bf16.mxu0 %v1902_v10  ;;  %1722 = vmatprep.subr.bf16.mxu1 %v1902_v10 }
  0xf1   : > { %1616 = vmatpush3.bf16.msra.mxu0 %v1903_v13  ;;  %1730 = vmatpush3.bf16.msra.mxu1 %v1903_v13 }
  0xf2   : > { %1617 = vmatprep.subr.bf16.mxu0 %v1904_v14  ;;  %1723 = vmatprep.subr.bf16.mxu1 %v1904_v14 }
  0xf5   : > { %1618 = vmatpush3.bf16.msra.mxu0 %v1905_v15  ;;  %1731 = vmatpush3.bf16.msra.mxu1 %v1905_v15 }
  0xf6   : > { %1619 = vmatprep.subr.bf16.mxu0 %v1906_v16  ;;  %1724 = vmatprep.subr.bf16.mxu1 %v1906_v16 }
  0xf9   : > { %1620 = vmatpush3.bf16.msra.mxu0 %v1907_v17  ;;  %1732 = vmatpush3.bf16.msra.mxu1 %v1907_v17 }
  0xfc   : > { %697 = vmatmul.mubr.bf16.vlgmr.msra.gmra.mrb[0].mxu0 %v1908_v18  ;;  %761 = vmatmul.mubr.bf16.vlgmr.msra.gmra.mrb[0].mxu1 %v1911_v19 }
  0xfd   : > { %704 = vmatprep.mubr.bf16.mxu0 %v1914_v20  ;;  %768 = vmatprep.mubr.bf16.mxu1 %v1916_v21 }
 0x104   : > { %705 = vmatmul.mubr.bf16.gmra.mrb[4].mxu0 %v1918_v22  ;;  %769 = vmatmul.mubr.bf16.gmra.mrb[4].mxu1 %v1919_v23 }
 0x105   : > { %712 = vmatprep.mubr.bf16.mxu0 %v1920_v24  ;;  %776 = vmatprep.mubr.bf16.mxu1 %v1922_v25 }
 0x10c   : > { %713 = vmatmul.mubr.bf16.gmra.mrb[8].mxu0 %v1924_v26  ;;  %777 = vmatmul.mubr.bf16.gmra.mrb[8].mxu1 %v1925_v27 }
 0x10d   : > { %720 = vmatprep.mubr.bf16.mxu0 %v1926_v28  ;;  %784 = vmatprep.mubr.bf16.mxu1 %v1928_v29 }
 0x114   : > { %721 = vmatmul.mubr.bf16.gmra.mrb[12].mxu0 %v1930_v30  ;;  %785 = vmatmul.mubr.bf16.gmra.mrb[12].mxu1 %v1931_v31 }
 0x115   : > { %728 = vmatprep.mubr.bf16.mxu0 %v1932_v32  ;;  %792 = vmatprep.mubr.bf16.mxu1 %v1934_v33 }
 0x11c   : > { %729 = vmatmul.mubr.bf16.gmra.mrb[16].mxu0 %v1936_v34  ;;  %793 = vmatmul.mubr.bf16.gmra.mrb[16].mxu1 %v1937_v35 }
 0x11d   : > { %736 = vmatprep.mubr.bf16.mxu0 %v1938_v36  ;;  %800 = vmatprep.mubr.bf16.mxu1 %v1940_v37 }
 0x124   : > { %737 = vmatmul.mubr.bf16.gmra.mrb[20].mxu0 %v1942_v38  ;;  %801 = vmatmul.mubr.bf16.gmra.mrb[20].mxu1 %v1943_v39 }
 0x125   : > { %744 = vmatprep.mubr.bf16.mxu0 %v1944_v40  ;;  %808 = vmatprep.mubr.bf16.mxu1 %v1946_v41 }
 0x12c   : > { %745 = vmatmul.mubr.bf16.gmra.mrb[24].mxu0 %v1948_v42  ;;  %809 = vmatmul.mubr.bf16.gmra.mrb[24].mxu1 %v1949_v43 }
 0x12d   : > { %752 = vmatprep.mubr.bf16.mxu0 %v1950_v44  ;;  %816 = vmatprep.mubr.bf16.mxu1 %v1952_v45 }
 0x134   : > { %753 = vmatmul.mubr.bf16.gmra.mrb[28].mxu0 %v1954_v46  ;;  %817 = vmatmul.mubr.bf16.gmra.mrb[28].mxu1 %v1955_v47 }
 0x1cf   : > { %v1621_v48 = vpop.f32.mrb[0].mxu0  ;;  %v1669_v49 = vpop.f32.mrb[0].mxu1 }
 0x1d0   : > { %v1622_v50 = vpop.f32.mrb[1].mxu0  ;;  %v1670_v51 = vpop.f32.mrb[1].mxu1 }
 0x1d1   : > { %v2667_v52 = vadd.f32 %v1622_v50, %v1621_v48  ;;  %v2669_v53 = vadd.f32 %v1670_v51, %v1669_v49  ;;  %v1624_v54 = vpop.f32.mrb[2].mxu0  ;;  %v1672_v55 = vpop.f32.mrb[2].mxu1 }
 0x1d2   : > { %v1625_v56 = vpop.f32.mrb[3].mxu0  ;;  %v1673_v57 = vpop.f32.mrb[3].mxu1 }
 0x1d3   : > { %v2671_v58 = vadd.f32 %v1625_v56, %v1624_v54  ;;  %v2673_v59 = vadd.f32 %v1673_v57, %v1672_v55  ;;  %829 = vst [vmem:[#allocation2] sm:$0xff] (!%p1434_p11), %v2667_v52  ;;  %845 = vst [vmem:[#allocation2 + $0x80] sm:$0xff] (!%p1434_p11), %v2669_v53 }
 0x1d5   : > { %830 = vst [vmem:[#allocation2 + $0x8] sm:$0xff] (!%p1434_p11), %v2671_v58  ;;  %846 = vst [vmem:[#allocation2 + $0x88] sm:$0xff] (!%p1434_p11), %v2673_v59 }
 0x1d7   : > { %v1627_v60 = vpop.f32.mrb[4].mxu0  ;;  %v1675_v61 = vpop.f32.mrb[4].mxu1 }
 0x1d8   : > { %v1628_v62 = vpop.f32.mrb[5].mxu0  ;;  %v1676_v63 = vpop.f32.mrb[5].mxu1 }
 0x1d9   : > { %v2675_v0 = vadd.f32 %v1628_v62, %v1627_v60  ;;  %v2677_v1 = vadd.f32 %v1676_v63, %v1675_v61  ;;  %v1630_v2 = vpop.f32.mrb[6].mxu0  ;;  %v1678_v3 = vpop.f32.mrb[6].mxu1 }
 0x1da   : > { %v1631_v4 = vpop.f32.mrb[7].mxu0  ;;  %v1679_v5 = vpop.f32.mrb[7].mxu1 }
 0x1db   : > { %v2679_v6 = vadd.f32 %v1631_v4, %v1630_v2  ;;  %v2681_v7 = vadd.f32 %v1679_v5, %v1678_v3  ;;  %831 = vst [vmem:[#allocation2 + $0x10] sm:$0xff] (!%p1434_p11), %v2675_v0  ;;  %847 = vst [vmem:[#allocation2 + $0x90] sm:$0xff] (!%p1434_p11), %v2677_v1 }
 0x1dd   : > { %832 = vst [vmem:[#allocation2 + $0x18] sm:$0xff] (!%p1434_p11), %v2679_v6  ;;  %848 = vst [vmem:[#allocation2 + $0x98] sm:$0xff] (!%p1434_p11), %v2681_v7 }
 0x1df   : > { %v1633_v8 = vpop.f32.mrb[8].mxu0  ;;  %v1681_v9 = vpop.f32.mrb[8].mxu1 }
 0x1e0   : > { %v1634_v10 = vpop.f32.mrb[9].mxu0  ;;  %v1682_v11 = vpop.f32.mrb[9].mxu1 }
 0x1e1   : > { %v2683_v12 = vadd.f32 %v1634_v10, %v1633_v8  ;;  %v2685_v13 = vadd.f32 %v1682_v11, %v1681_v9  ;;  %v1636_v14 = vpop.f32.mrb[10].mxu0  ;;  %v1684_v15 = vpop.f32.mrb[10].mxu1 }
 0x1e2   : > { %v1637_v16 = vpop.f32.mrb[11].mxu0  ;;  %v1685_v17 = vpop.f32.mrb[11].mxu1 }
 0x1e3   : > { %v2687_v18 = vadd.f32 %v1637_v16, %v1636_v14  ;;  %v2689_v19 = vadd.f32 %v1685_v17, %v1684_v15  ;;  %833 = vst [vmem:[#allocation2 + $0x20] sm:$0xff] (!%p1434_p11), %v2683_v12  ;;  %849 = vst [vmem:[#allocation2 + $0xa0] sm:$0xff] (!%p1434_p11), %v2685_v13 }
 0x1e5   : > { %834 = vst [vmem:[#allocation2 + $0x28] sm:$0xff] (!%p1434_p11), %v2687_v18  ;;  %850 = vst [vmem:[#allocation2 + $0xa8] sm:$0xff] (!%p1434_p11), %v2689_v19 }
 0x1e7   : > { %v1639_v20 = vpop.f32.mrb[12].mxu0  ;;  %v1687_v21 = vpop.f32.mrb[12].mxu1 }
 0x1e8   : > { %v1640_v22 = vpop.f32.mrb[13].mxu0  ;;  %v1688_v23 = vpop.f32.mrb[13].mxu1 }
 0x1e9   : > { %v2691_v24 = vadd.f32 %v1640_v22, %v1639_v20  ;;  %v2693_v25 = vadd.f32 %v1688_v23, %v1687_v21  ;;  %v1642_v26 = vpop.f32.mrb[14].mxu0  ;;  %v1690_v27 = vpop.f32.mrb[14].mxu1 }
 0x1ea   : > { %v1643_v28 = vpop.f32.mrb[15].mxu0  ;;  %v1691_v29 = vpop.f32.mrb[15].mxu1 }
 0x1eb   : > { %v2695_v30 = vadd.f32 %v1643_v28, %v1642_v26  ;;  %v2697_v31 = vadd.f32 %v1691_v29, %v1690_v27  ;;  %835 = vst [vmem:[#allocation2 + $0x30] sm:$0xff] (!%p1434_p11), %v2691_v24  ;;  %851 = vst [vmem:[#allocation2 + $0xb0] sm:$0xff] (!%p1434_p11), %v2693_v25 }
 0x1ed   : > { %836 = vst [vmem:[#allocation2 + $0x38] sm:$0xff] (!%p1434_p11), %v2695_v30  ;;  %852 = vst [vmem:[#allocation2 + $0xb8] sm:$0xff] (!%p1434_p11), %v2697_v31 }
 0x1ef   : > { %v1645_v32 = vpop.f32.mrb[16].mxu0  ;;  %v1693_v33 = vpop.f32.mrb[16].mxu1 }
 0x1f0   : > { %v1646_v34 = vpop.f32.mrb[17].mxu0  ;;  %v1694_v35 = vpop.f32.mrb[17].mxu1 }
 0x1f1   : > { %v2699_v36 = vadd.f32 %v1646_v34, %v1645_v32  ;;  %v2701_v37 = vadd.f32 %v1694_v35, %v1693_v33  ;;  %v1648_v38 = vpop.f32.mrb[18].mxu0  ;;  %v1696_v39 = vpop.f32.mrb[18].mxu1 }
 0x1f2   : > { %v1649_v40 = vpop.f32.mrb[19].mxu0  ;;  %v1697_v41 = vpop.f32.mrb[19].mxu1 }
 0x1f3   : > { %v2703_v42 = vadd.f32 %v1649_v40, %v1648_v38  ;;  %v2705_v43 = vadd.f32 %v1697_v41, %v1696_v39  ;;  %837 = vst [vmem:[#allocation2 + $0x40] sm:$0xff] (!%p1434_p11), %v2699_v36  ;;  %853 = vst [vmem:[#allocation2 + $0xc0] sm:$0xff] (!%p1434_p11), %v2701_v37 }
 0x1f5   : > { %838 = vst [vmem:[#allocation2 + $0x48] sm:$0xff] (!%p1434_p11), %v2703_v42  ;;  %854 = vst [vmem:[#allocation2 + $0xc8] sm:$0xff] (!%p1434_p11), %v2705_v43 }
 0x1f7   : > { %v1651_v44 = vpop.f32.mrb[20].mxu0  ;;  %v1699_v45 = vpop.f32.mrb[20].mxu1 }
 0x1f8   : > { %v1652_v46 = vpop.f32.mrb[21].mxu0  ;;  %v1700_v47 = vpop.f32.mrb[21].mxu1 }
 0x1f9   : > { %v2707_v48 = vadd.f32 %v1652_v46, %v1651_v44  ;;  %v2709_v49 = vadd.f32 %v1700_v47, %v1699_v45  ;;  %v1654_v50 = vpop.f32.mrb[22].mxu0  ;;  %v1702_v51 = vpop.f32.mrb[22].mxu1 }
 0x1fa   : > { %v1655_v54 = vpop.f32.mrb[23].mxu0  ;;  %v1703_v55 = vpop.f32.mrb[23].mxu1 }
 0x1fb   : > { %v2711_v56 = vadd.f32 %v1655_v54, %v1654_v50  ;;  %v2713_v57 = vadd.f32 %v1703_v55, %v1702_v51  ;;  %839 = vst [vmem:[#allocation2 + $0x50] sm:$0xff] (!%p1434_p11), %v2707_v48  ;;  %855 = vst [vmem:[#allocation2 + $0xd0] sm:$0xff] (!%p1434_p11), %v2709_v49 }
 0x1fd   : > { %840 = vst [vmem:[#allocation2 + $0x58] sm:$0xff] (!%p1434_p11), %v2711_v56  ;;  %856 = vst [vmem:[#allocation2 + $0xd8] sm:$0xff] (!%p1434_p11), %v2713_v57 }
 0x1ff   : > { %v1657_v60 = vpop.f32.mrb[24].mxu0  ;;  %v1705_v61 = vpop.f32.mrb[24].mxu1 }
 0x200   : > { %v1658_v62 = vpop.f32.mrb[25].mxu0  ;;  %v1706_v63 = vpop.f32.mrb[25].mxu1 }
 0x201   : > { %v2715_v2 = vadd.f32 %v1658_v62, %v1657_v60  ;;  %v2717_v3 = vadd.f32 %v1706_v63, %v1705_v61  ;;  %v1660_v4 = vpop.f32.mrb[26].mxu0  ;;  %v1708_v5 = vpop.f32.mrb[26].mxu1 }
 0x202   : > { %v1661_v8 = vpop.f32.mrb[27].mxu0  ;;  %v1709_v9 = vpop.f32.mrb[27].mxu1 }
 0x203   : > { %v2719_v10 = vadd.f32 %v1661_v8, %v1660_v4  ;;  %v2721_v11 = vadd.f32 %v1709_v9, %v1708_v5  ;;  %841 = vst [vmem:[#allocation2 + $0x60] sm:$0xff] (!%p1434_p11), %v2715_v2  ;;  %857 = vst [vmem:[#allocation2 + $0xe0] sm:$0xff] (!%p1434_p11), %v2717_v3 }
 0x205   : > { %828 = sbr.rel (%p1434_p11) target bundleno = 526 (0x20e), region = 52  ;;  %842 = vst [vmem:[#allocation2 + $0x68] sm:$0xff] (!%p1434_p11), %v2719_v10  ;;  %858 = vst [vmem:[#allocation2 + $0xe8] sm:$0xff] (!%p1434_p11), %v2721_v11 }
 0x207   : > { %v1663_v14 = vpop.f32.mrb[28].mxu0  ;;  %v1711_v15 = vpop.f32.mrb[28].mxu1 }
 0x208   : > { %v1664_v16 = vpop.f32.mrb[29].mxu0  ;;  %v1712_v17 = vpop.f32.mrb[29].mxu1 }
 0x209   : > { %v2723_v20 = vadd.f32 %v1664_v16, %v1663_v14  ;;  %v2725_v21 = vadd.f32 %v1712_v17, %v1711_v15  ;;  %v1666_v22 = vpop.f32.mrb[30].mxu0  ;;  %v1714_v23 = vpop.f32.mrb[30].mxu1 }
 0x20a   : > { %v1667_v26 = vpop.f32.mrb[31].mxu0  ;;  %v1715_v27 = vpop.f32.mrb[31].mxu1 }
 0x20b   : > { %v2727_v28 = vadd.f32 %v1667_v26, %v1666_v22  ;;  %v2729_v29 = vadd.f32 %v1715_v27, %v1714_v23  ;;  %843 = vst [vmem:[#allocation2 + $0x70] sm:$0xff] (!%p1434_p11), %v2723_v20  ;;  %859 = vst [vmem:[#allocation2 + $0xf0] sm:$0xff] (!%p1434_p11), %v2725_v21 }
 0x20d   : > { %844 = vst [vmem:[#allocation2 + $0x78] sm:$0xff] %v2727_v28  ;;  %860 = vst [vmem:[#allocation2 + $0xf8] sm:$0xff] %v2729_v29 }
 0x20e PF: > { %s3014_s23 = sld [smem:[#allocation25_spill]] }
 0x214   : > { %p1435_p8 = scmp.le.s32.totalorder %s3014_s23, 0 }
 0x215   : > { %v865_v32 = vld [vmem:[#allocation2] sm:$0xff] (!%p1435_p8)  ;;  %v866_v33 = vld [vmem:[#allocation2 + $0x8] sm:$0xff] (!%p1435_p8)  ;;  %v867_v34 = vld [vmem:[#allocation2 + $0x10] sm:$0xff] (!%p1435_p8) }
 0x216   : > { %864 = sbr.rel (%p1435_p8) target bundleno = 552 (0x228), region = 56  ;;  %v897_v35 = vadd.f32 (!%p1435_p8), %v2667_v52, %v865_v32  ;;  %v898_v38 = vadd.f32 (!%p1435_p8), %v2671_v58, %v866_v33  ;;  %v899_v39 = vadd.f32 (!%p1435_p8), %v2675_v0, %v867_v34  ;;  %v868_v40 = vld [vmem:[#allocation2 + $0x18] sm:$0xff] (!%p1435_p8)  ;;  %v869_v41 = vld [vmem:[#allocation2 + $0x20] sm:$0xff] (!%p1435_p8)  ;;  %v870_v44 = vld [vmem:[#allocation2 + $0x28] sm:$0xff] (!%p1435_p8) }
 0x217   : > { %v900_v45 = vadd.f32 (!%p1435_p8), %v2679_v6, %v868_v40  ;;  %v901_v46 = vadd.f32 (!%p1435_p8), %v2683_v12, %v869_v41  ;;  %v902_v47 = vadd.f32 (!%p1435_p8), %v2687_v18, %v870_v44  ;;  %v871_v50 = vld [vmem:[#allocation2 + $0x30] sm:$0xff] (!%p1435_p8)  ;;  %v872_v51 = vld [vmem:[#allocation2 + $0x38] sm:$0xff] (!%p1435_p8)  ;;  %v873_v54 = vld [vmem:[#allocation2 + $0x40] sm:$0xff] (!%p1435_p8) }
 0x218   : > { %929 = vst [vmem:[#allocation2] sm:$0xff] (!%p1435_p8), %v897_v35  ;;  %930 = vst [vmem:[#allocation2 + $0x8] sm:$0xff] (!%p1435_p8), %v898_v38  ;;  %v903_v52 = vadd.f32 (!%p1435_p8), %v2691_v24, %v871_v50  ;;  %v904_v58 = vadd.f32 (!%p1435_p8), %v2695_v30, %v872_v51  ;;  %v905_v0 = vadd.f32 (!%p1435_p8), %v2699_v36, %v873_v54  ;;  %v874_v55 = vld [vmem:[#allocation2 + $0x48] sm:$0xff] (!%p1435_p8)  ;;  %v875_v60 = vld [vmem:[#allocation2 + $0x50] sm:$0xff] (!%p1435_p8) }
 0x219   : > { %931 = vst [vmem:[#allocation2 + $0x10] sm:$0xff] (!%p1435_p8), %v899_v39  ;;  %v876_v61 = vld [vmem:[#allocation2 + $0x58] sm:$0xff] (!%p1435_p8)  ;;  %932 = vst [vmem:[#allocation2 + $0x18] sm:$0xff] (!%p1435_p8), %v900_v45  ;;  %v906_v6 = vadd.f32 (!%p1435_p8), %v2703_v42, %v874_v55  ;;  %v907_v12 = vadd.f32 (!%p1435_p8), %v2707_v48, %v875_v60  ;;  %v877_v62 = vld [vmem:[#allocation2 + $0x60] sm:$0xff] (!%p1435_p8) }
 0x21a   : > { %933 = vst [vmem:[#allocation2 + $0x20] sm:$0xff] (!%p1435_p8), %v901_v46  ;;  %934 = vst [vmem:[#allocation2 + $0x28] sm:$0xff] (!%p1435_p8), %v902_v47  ;;  %v908_v18 = vadd.f32 (!%p1435_p8), %v2711_v56, %v876_v61  ;;  %v878_v63 = vld [vmem:[#allocation2 + $0x68] sm:$0xff] (!%p1435_p8)  ;;  %v879_v4 = vld [vmem:[#allocation2 + $0x70] sm:$0xff] (!%p1435_p8)  ;;  %v909_v24 = vadd.f32 (!%p1435_p8), %v2715_v2, %v877_v62 }
 0x21b   : > { %935 = vst [vmem:[#allocation2 + $0x30] sm:$0xff] (!%p1435_p8), %v903_v52  ;;  %936 = vst [vmem:[#allocation2 + $0x38] sm:$0xff] (!%p1435_p8), %v904_v58  ;;  %v910_v30 = vadd.f32 (!%p1435_p8), %v2719_v10, %v878_v63  ;;  %v911_v36 = vadd.f32 (!%p1435_p8), %v2723_v20, %v879_v4  ;;  %v880_v5 = vld [vmem:[#allocation2 + $0x78] sm:$0xff] (!%p1435_p8)  ;;  %v881_v8 = vld [vmem:[#allocation2 + $0x80] sm:$0xff] (!%p1435_p8) }
 0x21c   : > { %937 = vst [vmem:[#allocation2 + $0x40] sm:$0xff] (!%p1435_p8), %v905_v0  ;;  %v882_v9 = vld [vmem:[#allocation2 + $0x88] sm:$0xff] (!%p1435_p8)  ;;  %938 = vst [vmem:[#allocation2 + $0x48] sm:$0xff] (!%p1435_p8), %v906_v6  ;;  %v912_v42 = vadd.f32 (!%p1435_p8), %v2727_v28, %v880_v5  ;;  %v913_v48 = vadd.f32 (!%p1435_p8), %v2669_v53, %v881_v8  ;;  %v883_v14 = vld [vmem:[#allocation2 + $0x90] sm:$0xff] (!%p1435_p8) }
 0x21d   : > { %939 = vst [vmem:[#allocation2 + $0x50] sm:$0xff] %v907_v12  ;;  %940 = vst [vmem:[#allocation2 + $0x58] sm:$0xff] %v908_v18  ;;  %v914_v56 = vadd.f32 %v2673_v59, %v882_v9  ;;  %v884_v15 = vld [vmem:[#allocation2 + $0x98] sm:$0xff]  ;;  %v885_v16 = vld [vmem:[#allocation2 + $0xa0] sm:$0xff]  ;;  %v915_v2 = vadd.f32 %v2677_v1, %v883_v14 }
 0x21e   : > { %941 = vst [vmem:[#allocation2 + $0x60] sm:$0xff] %v909_v24  ;;  %942 = vst [vmem:[#allocation2 + $0x68] sm:$0xff] %v910_v30  ;;  %v916_v10 = vadd.f32 %v2681_v7, %v884_v15  ;;  %v917_v17 = vadd.f32 %v2685_v13, %v885_v16  ;;  %v886_v20 = vld [vmem:[#allocation2 + $0xa8] sm:$0xff]  ;;  %v887_v22 = vld [vmem:[#allocation2 + $0xb0] sm:$0xff] }
 0x21f   : > { %943 = vst [vmem:[#allocation2 + $0x70] sm:$0xff] %v911_v36  ;;  %v888_v23 = vld [vmem:[#allocation2 + $0xb8] sm:$0xff]  ;;  %944 = vst [vmem:[#allocation2 + $0x78] sm:$0xff] %v912_v42  ;;  %v918_v53 = vadd.f32 %v2689_v19, %v886_v20  ;;  %v919_v59 = vadd.f32 %v2693_v25, %v887_v22  ;;  %v889_v27 = vld [vmem:[#allocation2 + $0xc0] sm:$0xff] }
 0x220   : > { %945 = vst [vmem:[#allocation2 + $0x80] sm:$0xff] %v913_v48  ;;  %946 = vst [vmem:[#allocation2 + $0x88] sm:$0xff] %v914_v56  ;;  %v920_v26 = vadd.f32 %v2697_v31, %v888_v23  ;;  %v890_v28 = vld [vmem:[#allocation2 + $0xc8] sm:$0xff]  ;;  %v891_v32 = vld [vmem:[#allocation2 + $0xd0] sm:$0xff]  ;;  %v921_v1 = vadd.f32 %v2701_v37, %v889_v27 }
 0x221   : > { %947 = vst [vmem:[#allocation2 + $0x90] sm:$0xff] %v915_v2  ;;  %948 = vst [vmem:[#allocation2 + $0x98] sm:$0xff] %v916_v10  ;;  %v922_v7 = vadd.f32 %v2705_v43, %v890_v28  ;;  %v923_v13 = vadd.f32 %v2709_v49, %v891_v32  ;;  %v892_v33 = vld [vmem:[#allocation2 + $0xd8] sm:$0xff]  ;;  %v893_v34 = vld [vmem:[#allocation2 + $0xe0] sm:$0xff] }
 0x222   : > { %949 = vst [vmem:[#allocation2 + $0xa0] sm:$0xff] %v917_v17  ;;  %v894_v35 = vld [vmem:[#allocation2 + $0xe8] sm:$0xff]  ;;  %950 = vst [vmem:[#allocation2 + $0xa8] sm:$0xff] %v918_v53  ;;  %v924_v19 = vadd.f32 %v2713_v57, %v892_v33  ;;  %v925_v25 = vadd.f32 %v2717_v3, %v893_v34  ;;  %v895_v38 = vld [vmem:[#allocation2 + $0xf0] sm:$0xff] }
 0x223   : > { %951 = vst [vmem:[#allocation2 + $0xb0] sm:$0xff] %v919_v59  ;;  %952 = vst [vmem:[#allocation2 + $0xb8] sm:$0xff] %v920_v26  ;;  %v926_v31 = vadd.f32 %v2721_v11, %v894_v35  ;;  %v896_v39 = vld [vmem:[#allocation2 + $0xf8] sm:$0xff]  ;;  %v927_v37 = vadd.f32 %v2725_v21, %v895_v38 }
 0x224   : > { %953 = vst [vmem:[#allocation2 + $0xc0] sm:$0xff] %v921_v1  ;;  %954 = vst [vmem:[#allocation2 + $0xc8] sm:$0xff] %v922_v7  ;;  %v928_v43 = vadd.f32 %v2729_v29, %v896_v39 }
 0x225   : > { %955 = vst [vmem:[#allocation2 + $0xd0] sm:$0xff] %v923_v13  ;;  %956 = vst [vmem:[#allocation2 + $0xd8] sm:$0xff] %v924_v19 }
 0x226   : > { %957 = vst [vmem:[#allocation2 + $0xe0] sm:$0xff] %v925_v25  ;;  %958 = vst [vmem:[#allocation2 + $0xe8] sm:$0xff] %v926_v31 }
 0x227   : > { %959 = vst [vmem:[#allocation2 + $0xf0] sm:$0xff] %v927_v37  ;;  %960 = vst [vmem:[#allocation2 + $0xf8] sm:$0xff] %v928_v43 }
 0x228 PF: > { %s3015_s4 = sld [smem:[#allocation25_spill]] }
 0x22e   : > { %p1436_p10 = scmp.ne.s32.totalorder %s3015_s4, 1 }
 0x22f   : > { %v965_v49 = vld [vmem:[#allocation2] sm:$0xff] (!%p1436_p10)  ;;  %v966_v57 = vld [vmem:[#allocation2 + $0x8] sm:$0xff] (!%p1436_p10)  ;;  %v967_v40 = vld [vmem:[#allocation2 + $0x10] sm:$0xff] (!%p1436_p10) }
 0x230   : > { %964 = sbr.rel (%p1436_p10) target bundleno = 585 (0x249), region = 60  ;;  %v2798_v3 = vld [vmem:[#allocation11] ss:$0 sm:$0xff] (!%p1436_p10)  ;;  %v968_v29 = vld [vmem:[#allocation2 + $0x18] sm:$0xff] (!%p1436_p10)  ;;  %v970_v46 = vld [vmem:[#allocation2 + $0x28] sm:$0xff] (!%p1436_p10) }
 0x231   : > { %v1004_v11 = vadd.f32 (!%p1436_p10), %v2798_v3, %v965_v49  ;;  %v1005_v21 = vadd.f32 (!%p1436_p10), %v2798_v3, %v966_v57  ;;  %v969_v41 = vld [vmem:[#allocation2 + $0x20] sm:$0xff] (!%p1436_p10)  ;;  %v1006_v44 = vadd.f32 (!%p1436_p10), %v2798_v3, %v967_v40  ;;  %v1007_v45 = vadd.f32 (!%p1436_p10), %v2798_v3, %v968_v29  ;;  %v971_v50 = vld [vmem:[#allocation2 + $0x30] sm:$0xff] (!%p1436_p10)  ;;  %v972_v51 = vld [vmem:[#allocation2 + $0x38] sm:$0xff] (!%p1436_p10) }
 0x232   : > { %v1008_v47 = vadd.f32 (!%p1436_p10), %v2798_v3, %v969_v41  ;;  %v1009_v58 = vadd.f32 (!%p1436_p10), %v2798_v3, %v970_v46  ;;  %v1010_v0 = vadd.f32 (!%p1436_p10), %v2798_v3, %v971_v50  ;;  %v973_v55 = vld [vmem:[#allocation2 + $0x40] sm:$0xff] (!%p1436_p10)  ;;  %v974_v60 = vld [vmem:[#allocation2 + $0x48] sm:$0xff] (!%p1436_p10)  ;;  %v975_v61 = vld [vmem:[#allocation2 + $0x50] sm:$0xff] (!%p1436_p10)  ;;  %v1011_v62 = vadd.f32 (!%p1436_p10), %v2798_v3, %v972_v51 }
 0x233   : > { %v1036_v54 = vmax.f32 (!%p1436_p10), %v1004_v11, 0.0  ;;  %v1037_v52 = vmax.f32 (!%p1436_p10), %v1005_v21, 0.0  ;;  %v1038_v6 = vmax.f32 (!%p1436_p10), %v1006_v44, 0.0  ;;  %v1039_v12 = vmax.f32 (!%p1436_p10), %v1007_v45, 0.0  ;;  %v976_v63 = vld [vmem:[#allocation2 + $0x58] sm:$0xff] (!%p1436_p10)  ;;  %v977_v4 = vld [vmem:[#allocation2 + $0x60] sm:$0xff] (!%p1436_p10) }
 0x234   : > { %v1040_v18 = vmax.f32 (!%p1436_p10), %v1008_v47, 0.0  ;;  %v1041_v30 = vmax.f32 (!%p1436_p10), %v1009_v58, 0.0  ;;  %v1042_v36 = vmax.f32 (!%p1436_p10), %v1010_v0, 0.0  ;;  %v1012_v5 = vadd.f32 (!%p1436_p10), %v2798_v3, %v973_v55  ;;  %v978_v8 = vld [vmem:[#allocation2 + $0x68] sm:$0xff] (!%p1436_p10)  ;;  %v979_v14 = vld [vmem:[#allocation2 + $0x70] sm:$0xff] (!%p1436_p10)  ;;  %v980_v15 = vld [vmem:[#allocation2 + $0x78] sm:$0xff] (!%p1436_p10) }
 0x235   : > { %v1513_v24 = vpack.c.bf16 (!%p1436_p10), %v1037_v52, %v1036_v54  ;;  %v1518_v9 = vpack.c.bf16 (!%p1436_p10), %v1039_v12, %v1038_v6  ;;  %v1043_v42 = vmax.f32 (!%p1436_p10), %v1011_v62, 0.0  ;;  %v1013_v48 = vadd.f32 (!%p1436_p10), %v2798_v3, %v974_v60  ;;  %v981_v20 = vld [vmem:[#allocation2 + $0x80] sm:$0xff] (!%p1436_p10)  ;;  %v982_v22 = vld [vmem:[#allocation2 + $0x88] sm:$0xff] (!%p1436_p10)  ;;  %v983_v27 = vld [vmem:[#allocation2 + $0x90] sm:$0xff] (!%p1436_p10) }
 0x236   : > { %v1014_v56 = vadd.f32 (!%p1436_p10), %v2798_v3, %v975_v61  ;;  %v1523_v16 = vpack.c.bf16 (!%p1436_p10), %v1041_v30, %v1040_v18  ;;  %v1044_v2 = vmax.f32 (!%p1436_p10), %v1012_v5, 0.0  ;;  %v1015_v10 = vadd.f32 (!%p1436_p10), %v2798_v3, %v976_v63  ;;  %v984_v13 = vld [vmem:[#allocation2 + $0x98] sm:$0xff] (!%p1436_p10)  ;;  %v985_v25 = vld [vmem:[#allocation2 + $0xa0] sm:$0xff] (!%p1436_p10)  ;;  %v986_v31 = vld [vmem:[#allocation2 + $0xa8] sm:$0xff] (!%p1436_p10) }
 0x237   : > { %1514 = vst [vmem:[%s2616_s15] sm:$0xff] %v1513_v24   ;;  %v1016_v17 = vadd.f32 %v2798_v3, %v977_v4  ;;  %1590 = vst [vmem:[%s2616_s15 + $0x8] sm:$0xff] %v1518_v9   ;;  %v1528_v23 = vpack.c.bf16 %v1043_v42, %v1042_v36  ;;  %v1045_v53 = vmax.f32 %v1013_v48, 0.0  ;;  %v1017_v26 = vadd.f32 %v2798_v3, %v978_v8  ;;  %v987_v49 = vld [vmem:[#allocation2 + $0xb0] sm:$0xff]  ;;  %v988_v57 = vld [vmem:[#allocation2 + $0xb8] sm:$0xff] }
 0x238   : > { %v1046_v59 = vmax.f32 %v1014_v56, 0.0  ;;  %1591 = vst [vmem:[%s2616_s15 + $0x10] sm:$0xff] %v1523_v16   ;;  %v1047_v28 = vmax.f32 %v1015_v10, 0.0  ;;  %v1018_v1 = vadd.f32 %v2798_v3, %v979_v14  ;;  %v1019_v7 = vadd.f32 %v2798_v3, %v980_v15  ;;  %v989_v41 = vld [vmem:[#allocation2 + $0xc0] sm:$0xff]  ;;  %v990_v44 = vld [vmem:[#allocation2 + $0xc8] sm:$0xff]  ;;  %v991_v51 = vld [vmem:[#allocation2 + $0xd0] sm:$0xff] }
 0x239   : > { %v1048_v32 = vmax.f32 %v1016_v17, 0.0  ;;  %1592 = vst [vmem:[%s2616_s15 + $0x18] sm:$0xff] %v1528_v23   ;;  %v1533_v33 = vpack.c.bf16 %v1045_v53, %v1044_v2  ;;  %v1049_v34 = vmax.f32 %v1017_v26, 0.0  ;;  %v1020_v35 = vadd.f32 %v2798_v3, %v981_v20  ;;  %v992_v55 = vld [vmem:[#allocation2 + $0xd8] sm:$0xff]  ;;  %v993_v18 = vld [vmem:[#allocation2 + $0xe0] sm:$0xff]  ;;  %v994_v62 = vld [vmem:[#allocation2 + $0xe8] sm:$0xff] }
 0x23a   : > { %v1021_v19 = vadd.f32 %v2798_v3, %v982_v22  ;;  %v1538_v38 = vpack.c.bf16 %v1047_v28, %v1046_v59  ;;  %v1050_v39 = vmax.f32 %v1018_v1, 0.0  ;;  %v1051_v37 = vmax.f32 %v1019_v7, 0.0  ;;  %v995_v36 = vld [vmem:[#allocation2 + $0xf0] sm:$0xff]  ;;  %v996_v5 = vld [vmem:[#allocation2 + $0xf8] sm:$0xff] }
 0x23b   : > { %v1022_v43 = vadd.f32 %v2798_v3, %v983_v27  ;;  %1593 = vst [vmem:[%s2616_s15 + $0x20] sm:$0xff] %v1533_v33   ;;  %v1543_v11 = vpack.c.bf16 %v1049_v34, %v1048_v32  ;;  %v1052_v21 = vmax.f32 %v1020_v35, 0.0  ;;  %v1023_v29 = vadd.f32 %v2798_v3, %v984_v13 }
 0x23c   : > { %v1053_v40 = vmax.f32 %v1021_v19, 0.0  ;;  %1594 = vst [vmem:[%s2616_s15 + $0x28] sm:$0xff] %v1538_v38   ;;  %v1548_v45 = vpack.c.bf16 %v1051_v37, %v1050_v39  ;;  %v1024_v47 = vadd.f32 %v2798_v3, %v985_v25  ;;  %v1025_v50 = vadd.f32 %v2798_v3, %v986_v31 }
 0x23d   : > { %v1054_v46 = vmax.f32 %v1022_v43, 0.0  ;;  %1595 = vst [vmem:[%s2616_s15 + $0x30] sm:$0xff] %v1543_v11   ;;  %v1055_v52 = vmax.f32 %v1023_v29, 0.0  ;;  %v1026_v58 = vadd.f32 %v2798_v3, %v987_v49  ;;  %v1027_v0 = vadd.f32 %v2798_v3, %v988_v57 }
 0x23e   : > { %v1553_v54 = vpack.c.bf16 %v1053_v40, %v1052_v21  ;;  %1596 = vst [vmem:[%s2616_s15 + $0x38] sm:$0xff] %v1548_v45   ;;  %v1056_v60 = vmax.f32 %v1024_v47, 0.0  ;;  %v1057_v61 = vmax.f32 %v1025_v50, 0.0  ;;  %v1028_v6 = vadd.f32 %v2798_v3, %v989_v41 }
 0x23f   : > { %v1029_v12 = vadd.f32 %v2798_v3, %v990_v44  ;;  %v1558_v63 = vpack.c.bf16 %v1055_v52, %v1054_v46  ;;  %v1058_v4 = vmax.f32 %v1026_v58, 0.0  ;;  %v1059_v24 = vmax.f32 %v1027_v0, 0.0 }
 0x240   : > { %1597 = vst [vmem:[%s2616_s15 + $0x40] sm:$0xff] %v1553_v54   ;;  %v1030_v30 = vadd.f32 %v2798_v3, %v991_v51  ;;  %v1563_v8 = vpack.c.bf16 %v1057_v61, %v1056_v60  ;;  %v1060_v9 = vmax.f32 %v1028_v6, 0.0  ;;  %v1031_v48 = vadd.f32 %v2798_v3, %v992_v55 }
 0x241   : > { %v1061_v42 = vmax.f32 %v1029_v12, 0.0  ;;  %1598 = vst [vmem:[%s2616_s15 + $0x48] sm:$0xff] %v1558_v63   ;;  %v1568_v56 = vpack.c.bf16 %v1059_v24, %v1058_v4  ;;  %v1032_v15 = vadd.f32 %v2798_v3, %v993_v18  ;;  %v1033_v16 = vadd.f32 %v2798_v3, %v994_v62 }
 0x242   : > { %v1062_v14 = vmax.f32 %v1030_v30, 0.0  ;;  %1599 = vst [vmem:[%s2616_s15 + $0x50] sm:$0xff] %v1563_v8   ;;  %v1063_v10 = vmax.f32 %v1031_v48, 0.0  ;;  %v1034_v17 = vadd.f32 %v2798_v3, %v995_v36  ;;  %v1035_v20 = vadd.f32 %v2798_v3, %v996_v5 }
 0x243   : > { %v1573_v2 = vpack.c.bf16 %v1061_v42, %v1060_v9  ;;  %1600 = vst [vmem:[%s2616_s15 + $0x58] sm:$0xff] %v1568_v56   ;;  %v1064_v22 = vmax.f32 %v1032_v15, 0.0  ;;  %v1065_v23 = vmax.f32 %v1033_v16, 0.0 }
 0x244   : > { %v1578_v53 = vpack.c.bf16 %v1063_v10, %v1062_v14  ;;  %v1066_v59 = vmax.f32 %v1034_v17, 0.0  ;;  %v1067_v26 = vmax.f32 %v1035_v20, 0.0 }
 0x245   : > { %1601 = vst [vmem:[%s2616_s15 + $0x60] sm:$0xff] %v1573_v2   ;;  %v1583_v27 = vpack.c.bf16 %v1065_v23, %v1064_v22 }
 0x246   : > { %1602 = vst [vmem:[%s2616_s15 + $0x68] sm:$0xff] %v1578_v53   ;;  %v1588_v28 = vpack.c.bf16 %v1067_v26, %v1066_v59 }
 0x247   : > { %1603 = vst [vmem:[%s2616_s15 + $0x70] sm:$0xff] %v1583_v27  }
 0x248   : > { %1604 = vst [vmem:[%s2616_s15 + $0x78] sm:$0xff] %v1588_v28  }
 0x249 PF: > { %s3016_s16 = sld [smem:[#allocation26_spill]]  ;;  %s3018_s27 = sld [smem:[#allocation33_spill]] }
 0x24a   : > { %s3019_s8 = sld [smem:[#allocation36_spill]]  ;;  %s1242_s0 = sshll.u32 %s2616_s15, 4  ;;  %s2855_s0 = int_to_ptr.vmem [resolvable:$true] %s1242_s0 }
 0x24b   : > { %s2859_s17 = scalar_lea.sflag [#allocation8], %s313_s24  ;;  %s2066_s21 = scalar_lea.vmem %s2855_s0, 2048 }
 0x24c   : > { %p2067_p9 = scmp.ne.s32.totalorder %s2855_s0, %s2066_s21  ;;  %s2234_s1 = smov [#allocation12]  }
 0x24d   : > { %s2070_s29 = sshll.u32 %s2234_s1, 4  ;;  %s2071_s29 = int_to_ptr.vmem [resolvable:$false] %s2070_s29 }
 0x24e   : > { %s2072_s28 = scalar_lea.vmem %s2071_s29, 4096  ;;  %p2073_p2 = scmp.lt.s32.totalorder %s2855_s0, %s2071_s29 }
 0x24f   : > { %s1509_s30 = sshll.u32 %s3016_s16, 11  ;;  %p3021_p12 = scmp.ne.s32.totalorder %s3018_s27, 0 }
 0x250   : > { %s3020_s6 = smov %s3019_s8  ;;  %s2852_s22 = scalar_lea.hbm %s3019_s8, %s1509_s30 }
 0x251   : > { %p2068_p13 = pnand %p2067_p9, %p3021_p12  ;;  %p2074_p0 = scmp.lt.s32.totalorder %s2072_s28, %s2066_s21 }
 0x253   : > { %p2069_p4 = pneg %p2068_p13  ;;  %p2075_p5 = por %p2074_p0, %p2073_p2 }
 0x255   : > { %p2076_p6 = pnand %p2075_p5, %p2069_p4 }
 0x257   : > { %2079 = shalt.err (!%p2076_p6)
}
 0x258   : > { %s2080_s24 = scalar_lea.hbm %s2852_s22, 2048  ;;  %s2084_s15 = scalar_lea.hbm %s3020_s6, 8192 }
 0x259   : > { %p2081_p1 = scmp.ne.s32.totalorder %s2852_s22, %s2080_s24  ;;  %p2085_p11 = scmp.lt.u32.totalorder %s2852_s22, %s3020_s6 }
 0x25a   : > { %p2086_p8 = scmp.lt.u32.totalorder %s2084_s15, %s2080_s24  ;;  %p2088_p9 = scmp.lt.u32.totalorder %s2080_s24, %s2852_s22 }
 0x25b   : > { %p2082_p3 = pnand %p2081_p1, %p3021_p12 }
 0x25c   : > { %p2087_p10 = por %p2086_p8, %p2085_p11 }
 0x25d   : > { %p2083_p7 = pneg %p2082_p3 }
 0x25e   : > { %p2089_p13 = por %p2088_p9, %p2087_p10 }
 0x260   : > { %p2090_p4 = pnand %p2089_p13, %p2083_p7 }
 0x262   : > { %2093 = shalt.err (!%p2090_p4)
}
 0x263   : > { %s2235_s23 = smov 64   ;;  %s2236_s4 = smov 4  }
 0x264   : > { %1745 = dma.vmem_to_hbm [thread:$0]  (%p3021_p12), %s2855_s0, 2048, %s2852_s22, %s2859_s17, %s2235_s23, %s2235_s23, %s2236_s4  }
 0x265 PF: > { %s3022_s16 = sld [smem:[#allocation22_spill]]  ;;  %s3023_s9 = sld [smem:[#allocation34_spill]] }
 0x266   : > { %p1769_p2 = scmp.ge.s32.totalorder %s2222_s19, 2 }
 0x26b   : > { %s1257_s30 = sand.u32 1, %s3022_s16   ;;  %p3024_p0 = scmp.ne.s32.totalorder %s3023_s9, 0 }
 0x26c   : > { %s1258_s26 = scalar_lea.sflag [#allocation8], %s1257_s30 }
 0x26d   : > { %p1763_p5 = pnand %p1769_p2, %p3024_p0 }
 0x26f   : > { %2165 = dma.done.wait (!%p1763_p5), %s1258_s26, 2048  }
 0x270   : > { %2167 = vsyncadd (!%p1763_p5), %s1258_s26, 4294965248  ;;  %s32_s19 = sadd.s32 1, %s2222_s19   ;;  %s3026_s0 = sld [smem:[#allocation23_spill]] }
 0x271   : > { %p2888_p6 = scmp.ge.s32.totalorder %s32_s19, 10   ;;  %s3027_s1 = sld [smem:[#allocation24_spill]] }
 0x272   : > { %s3028_s8 = sld [smem:[#allocation32_spill]]  ;;  %s3029_s27 = sld [smem:[#allocation31_spill]] }
 0x273   : > { %s3030_s22 = sld [smem:[#allocation30_spill]]  ;;  %s3031_s15 = sld [smem:[#allocation27_spill]] }
 0x274   : > { %s3032_s17 = sld [smem:[#allocation28_spill]]  ;;  %s3033_s21 = sld [smem:[#allocation29_spill]] }
 0x275   : > { %s3035_s9 = smov %s2186_s10  ;;  %s3036_s10 = smov %s2190_s11 }
 0x276   : > { %s3038_s12 = smov %s2198_s13  ;;  %s3039_s13 = smov %s2202_s14 }
 0x277   : > { %s3041_s16 = smov %s2218_s18  ;;  %31 = sbr.rel (!%p2888_p6) target bundleno = 35 (0x23), region = 110 }
 0x278   : > { %s3037_s11 = smov %s3029_s27 }
 0x279   : > { %s3040_s14 = smov %s3030_s22 }
 0x27a   : > { %s3042_s18 = smov %s3033_s21 }
 0x27e   :  { %1263 = vsyncpa [#allocation7], 1 }
 0x27f   :  { %1265 = vsyncpa [#allocation7 + $0x1], 1 }
 0x280   :  { %1266 = vsyncpa [#allocation10], 1 }
 0x281   :  { %1268 = vsyncpa [#allocation10 + $0x1], 1 }
 0x282   :  { %1269 = vsyncpa [#allocation8], 1 }
 0x283   :  { %1271 = vsyncpa [#allocation8 + $0x1], 1 }

</bundles_post_ra>
